<compile_context>
chip_gen: v6e
topology: v6e:2x2x1
jax: 0.10.0
libtpu: 0.0.40
codegen_flags: <defaults>
</compile_context>

<pallas_src>
import math
import functools

import jax
import jax.numpy as jnp
from jax.experimental import pallas as pl
from jax.experimental.pallas import tpu as pltpu


def _round_up(x, m):
    return ((x + m - 1) // m) * m


def _attention_kernel(q_ref, k_ref, v_ref, wt_ref, b_ref, o_ref, *, L, d_key,
                      inv_scale):
    # q_ref : (B, Dq)        query rows (middle singleton axis squeezed)
    # k_ref : (B, L*Dk)      key rows, flattened (free row-major reshape)
    # v_ref : (B, L)         value rows (trailing singleton squeezed)
    # wt_ref: (Dq, Dk)       pre-transposed Linear weight (W^T), VMEM-resident
    # b_ref : (1, Dk)        bias, VMEM-resident
    # o_ref : (1, B)         lane-dense output block
    q = q_ref[...]                                   # (B, Dq)

    # Linear projection on the MXU: (B, Dq) @ (Dq, Dk), bias folded in as one add.
    q_proj = jnp.dot(q, wt_ref[...],
                     preferred_element_type=jnp.float32) + b_ref[...]   # (B, Dk)

    # Scores on the VPU/XLU: per key position l, broadcast-multiply + lane reduce
    # over d_key.  L is tiny (2p+1) so this is a static unroll; it overlaps with
    # the MXU projection instead of issuing B tiny matmuls.
    k = k_ref[...].astype(jnp.float32)               # (B, L*Dk)
    cols = []
    for l in range(L):
        kl = k[:, l * d_key:(l + 1) * d_key]         # (B, Dk), static lane slice
        cols.append(jnp.sum(q_proj * kl, axis=-1, keepdims=True))       # (B, 1)
    scores = jnp.concatenate(cols, axis=-1) * inv_scale                 # (B, L)

    # Numerically stable softmax over L; reciprocal on the EUP.
    scores = scores - jnp.max(scores, axis=-1, keepdims=True)
    p = jnp.exp(scores)
    p = p * pl.reciprocal(jnp.sum(p, axis=-1, keepdims=True), approx=True)

    # Value weighting.  The row-sum is done as a tiny (1, L) @ (L, B) MXU matmul
    # so the result lands directly in lane-major (1, B) form -> lane-dense store.
    pv = p * v_ref[...].astype(jnp.float32)          # (B, L)
    ones_row = jnp.ones((1, L), dtype=jnp.float32)
    out_row = jnp.dot(ones_row, pv.T, preferred_element_type=jnp.float32)  # (1, B)
    o_ref[...] = out_row.astype(o_ref.dtype)


def attention_forward(query, key, value, wq_weight, wq_bias, *, block_rows=1024):
    """query: (n,1,Dq)  key: (n,L,Dk)  value: (n,L,1)  -> (n,1,1)."""
    n, one, d_query = query.shape
    _, L, d_key = key.shape
    assert one == 1 and value.shape == (n, L, 1)

    inv_scale = 1.0 / math.sqrt(d_key)

    # Batch-block size: multiple of 128 (lane-dense output), as large as the
    # batch allows (amortizes the ~0.35us grid-step overhead).
    block_rows = max(128, _round_up(block_rows, 128))
    B = min(block_rows, _round_up(n, 128))
    n_pad = _round_up(n, B)

    # Squeeze singleton axes / flatten key rows (free, row-major-contiguous).
    q2d = query.reshape(n, d_query)
    k2d = key.reshape(n, L * d_key)
    v2d = value.reshape(n, L)
    if n_pad != n:
        pad = n_pad - n
        q2d = jnp.pad(q2d, ((0, pad), (0, 0)))
        k2d = jnp.pad(k2d, ((0, pad), (0, 0)))
        v2d = jnp.pad(v2d, ((0, pad), (0, 0)))

    wq_t = wq_weight.T                      # (Dq, Dk): one-time XLA transpose
    bias2d = wq_bias.reshape(1, d_key)

    kernel = functools.partial(_attention_kernel, L=L, d_key=d_key,
                               inv_scale=inv_scale)

    out2d = pl.pallas_call(
        kernel,
        out_shape=jax.ShapeDtypeStruct((1, n_pad), query.dtype),
        grid_spec=pltpu.PrefetchScalarGridSpec(
            num_scalar_prefetch=0,
            grid=(n_pad // B,),
            in_specs=[
                pl.BlockSpec((B, d_query), lambda i: (i, 0)),        # query rows
                pl.BlockSpec((B, L * d_key), lambda i: (i, 0)),      # key rows
                pl.BlockSpec((B, L), lambda i: (i, 0)),              # value rows
                pl.BlockSpec((d_query, d_key), lambda i: (0, 0)),    # W^T (resident)
                pl.BlockSpec((1, d_key), lambda i: (0, 0)),          # bias (resident)
            ],
            out_specs=pl.BlockSpec((1, B), lambda i: (0, i)),        # lane-dense
        ),
        compiler_params=pltpu.CompilerParams(
            dimension_semantics=("parallel",),
        ),
    )(q2d, k2d, v2d, wq_t, bias2d)

    return out2d[0, :n].reshape(n, 1, 1)


def reference_forward(query, key, value, wq_weight, wq_bias):
    """Plain-JAX reference mirroring the PyTorch module (dropout in eval mode)."""
    d_key = key.shape[-1]
    q = jnp.einsum("nod,kd->nok", query, wq_weight) + wq_bias   # Linear
    dots = jnp.einsum("nok,nlk->nol", q, key) / math.sqrt(d_key)
    attn = jax.nn.softmax(dots, axis=-1)
    return jnp.einsum("nol,nlv->nov", attn, value)


def _check(n, d_query, d_key, p, seed, block_rows):
    L = 2 * p + 1
    key0 = jax.random.PRNGKey(seed)
    k_q, k_k, k_v, k_w, k_b = jax.random.split(key0, 5)

    query = jax.random.normal(k_q, (n, 1, d_query), dtype=jnp.float32)
    key_t = jax.random.normal(k_k, (n, L, d_key), dtype=jnp.float32)
    value = jax.random.normal(k_v, (n, L, 1), dtype=jnp.float32)

    bound = 1.0 / math.sqrt(d_query)
    wq_weight = jax.random.uniform(k_w, (d_key, d_query), dtype=jnp.float32,
                                   minval=-bound, maxval=bound)
    wq_bias = jax.random.uniform(k_b, (d_key,), dtype=jnp.float32,
                                 minval=-bound, maxval=bound)

    out = attention_forward(query, key_t, value, wq_weight, wq_bias,
                            block_rows=block_rows)
    out = jax.block_until_ready(out)

    ref = reference_forward(query, key_t, value, wq_weight, wq_bias)
    assert out.shape == (n, 1, 1), out.shape
    # Tolerance is slightly loosened vs 1e-5 because the softmax denominator
    # uses the approximate (EUP) reciprocal.
    assert jnp.allclose(out, ref, atol=2e-3, rtol=2e-3), (
        f"max abs diff = {jnp.max(jnp.abs(out - ref))}"
    )


if __name__ == "__main__":
    # Small, module-consistent shapes (single padded block).
    _check(n=8, d_query=32, d_key=32, p=4, seed=0, block_rows=1024)
    # Larger batch with a multi-step grid + padding (exercises the batched path).
    _check(n=1000, d_query=32, d_key=32, p=4, seed=1, block_rows=256)

    print("KERNEL_OK")
</pallas_src>

<mosaic_0001>
module attributes {stable_mosaic.version = 11 : i64} {
  func.func @_attention_kernel(%arg0: i32, %arg1: memref<128x32xf32, #tpu.memory_space<vmem>>, %arg2: memref<128x288xf32, #tpu.memory_space<vmem>>, %arg3: memref<128x9xf32, #tpu.memory_space<vmem>>, %arg4: memref<32x32xf32, #tpu.memory_space<vmem>>, %arg5: memref<1x32xf32, #tpu.memory_space<vmem>>, %arg6: memref<1x128xf32, #tpu.memory_space<vmem>>) attributes {dimension_semantics = [#tpu.dimension_semantics<parallel>], iteration_bounds = array<i64: 1>, scalar_prefetch = 0 : i64, scratch_operands = 0 : i64, tpu.core_type = #tpu.core_type<tc>, window_params = [{transform_indices = @transform_0, window_bounds = array<i64: 128, 32>}, {transform_indices = @transform_1, window_bounds = array<i64: 128, 288>}, {transform_indices = @transform_2, window_bounds = array<i64: 128, 9>}, {pipeline_mode = #tpu.pipeline_mode<synchronous>, transform_indices = @transform_3, window_bounds = array<i64: 32, 32>}, {pipeline_mode = #tpu.pipeline_mode<synchronous>, transform_indices = @transform_4, window_bounds = array<i64: 1, 32>}, {transform_indices = @transform_5, window_bounds = array<i64: 1, 128>}]} {
    %c0 = arith.constant 0 : index
    %c0_0 = arith.constant 0 : index
    %0 = vector.load %arg1[%c0, %c0_0] : memref<128x32xf32, #tpu.memory_space<vmem>>, vector<128x32xf32>
    %c0_1 = arith.constant 0 : index
    %c0_2 = arith.constant 0 : index
    %1 = vector.load %arg4[%c0_1, %c0_2] : memref<32x32xf32, #tpu.memory_space<vmem>>, vector<32x32xf32>
    %cst = arith.constant dense<0.000000e+00> : vector<128x32xf32>
    %2 = tpu.matmul %0, %1, %cst {dimension_numbers = #tpu.dot_dimension_numbers<[1], [0], [0], [1], [0, 0, 1, 1], [], []>} : vector<128x32xf32>, vector<32x32xf32>, vector<128x32xf32> -> vector<128x32xf32>
    %c0_3 = arith.constant 0 : index
    %c0_4 = arith.constant 0 : index
    %3 = vector.load %arg5[%c0_3, %c0_4] : memref<1x32xf32, #tpu.memory_space<vmem>>, vector<1x32xf32>
    %4 = vector.broadcast %3 : vector<1x32xf32> to vector<128x32xf32>
    %5 = arith.addf %2, %4 : vector<128x32xf32>
    %c0_5 = arith.constant 0 : index
    %c0_6 = arith.constant 0 : index
    %6 = vector.load %arg2[%c0_5, %c0_6] : memref<128x288xf32, #tpu.memory_space<vmem>>, vector<128x288xf32>
    %7 = vector.extract_strided_slice %6 {offsets = [0, 0], sizes = [128, 32], strides = [1, 1]} : vector<128x288xf32> to vector<128x32xf32>
    %8 = arith.mulf %5, %7 : vector<128x32xf32>
    %cst_7 = arith.constant dense<0.000000e+00> : vector<128xf32>
    %9 = vector.multi_reduction <add>, %8, %cst_7 [1] : vector<128x32xf32> to vector<128xf32>
    %10 = vector.shape_cast %9 : vector<128xf32> to vector<128x1xf32>
    %11 = vector.extract_strided_slice %6 {offsets = [0, 32], sizes = [128, 32], strides = [1, 1]} : vector<128x288xf32> to vector<128x32xf32>
    %12 = arith.mulf %5, %11 : vector<128x32xf32>
    %cst_8 = arith.constant dense<0.000000e+00> : vector<128xf32>
    %13 = vector.multi_reduction <add>, %12, %cst_8 [1] : vector<128x32xf32> to vector<128xf32>
    %14 = vector.shape_cast %13 : vector<128xf32> to vector<128x1xf32>
    %15 = vector.extract_strided_slice %6 {offsets = [0, 64], sizes = [128, 32], strides = [1, 1]} : vector<128x288xf32> to vector<128x32xf32>
    %16 = arith.mulf %5, %15 : vector<128x32xf32>
    %cst_9 = arith.constant dense<0.000000e+00> : vector<128xf32>
    %17 = vector.multi_reduction <add>, %16, %cst_9 [1] : vector<128x32xf32> to vector<128xf32>
    %18 = vector.shape_cast %17 : vector<128xf32> to vector<128x1xf32>
    %19 = vector.extract_strided_slice %6 {offsets = [0, 96], sizes = [128, 32], strides = [1, 1]} : vector<128x288xf32> to vector<128x32xf32>
    %20 = arith.mulf %5, %19 : vector<128x32xf32>
    %cst_10 = arith.constant dense<0.000000e+00> : vector<128xf32>
    %21 = vector.multi_reduction <add>, %20, %cst_10 [1] : vector<128x32xf32> to vector<128xf32>
    %22 = vector.shape_cast %21 : vector<128xf32> to vector<128x1xf32>
    %23 = vector.extract_strided_slice %6 {offsets = [0, 128], sizes = [128, 32], strides = [1, 1]} : vector<128x288xf32> to vector<128x32xf32>
    %24 = arith.mulf %5, %23 : vector<128x32xf32>
    %cst_11 = arith.constant dense<0.000000e+00> : vector<128xf32>
    %25 = vector.multi_reduction <add>, %24, %cst_11 [1] : vector<128x32xf32> to vector<128xf32>
    %26 = vector.shape_cast %25 : vector<128xf32> to vector<128x1xf32>
    %27 = vector.extract_strided_slice %6 {offsets = [0, 160], sizes = [128, 32], strides = [1, 1]} : vector<128x288xf32> to vector<128x32xf32>
    %28 = arith.mulf %5, %27 : vector<128x32xf32>
    %cst_12 = arith.constant dense<0.000000e+00> : vector<128xf32>
    %29 = vector.multi_reduction <add>, %28, %cst_12 [1] : vector<128x32xf32> to vector<128xf32>
    %30 = vector.shape_cast %29 : vector<128xf32> to vector<128x1xf32>
    %31 = vector.extract_strided_slice %6 {offsets = [0, 192], sizes = [128, 32], strides = [1, 1]} : vector<128x288xf32> to vector<128x32xf32>
    %32 = arith.mulf %5, %31 : vector<128x32xf32>
    %cst_13 = arith.constant dense<0.000000e+00> : vector<128xf32>
    %33 = vector.multi_reduction <add>, %32, %cst_13 [1] : vector<128x32xf32> to vector<128xf32>
    %34 = vector.shape_cast %33 : vector<128xf32> to vector<128x1xf32>
    %35 = vector.extract_strided_slice %6 {offsets = [0, 224], sizes = [128, 32], strides = [1, 1]} : vector<128x288xf32> to vector<128x32xf32>
    %36 = arith.mulf %5, %35 : vector<128x32xf32>
    %cst_14 = arith.constant dense<0.000000e+00> : vector<128xf32>
    %37 = vector.multi_reduction <add>, %36, %cst_14 [1] : vector<128x32xf32> to vector<128xf32>
    %38 = vector.shape_cast %37 : vector<128xf32> to vector<128x1xf32>
    %39 = vector.extract_strided_slice %6 {offsets = [0, 256], sizes = [128, 32], strides = [1, 1]} : vector<128x288xf32> to vector<128x32xf32>
    %40 = arith.mulf %5, %39 : vector<128x32xf32>
    %cst_15 = arith.constant dense<0.000000e+00> : vector<128xf32>
    %41 = vector.multi_reduction <add>, %40, %cst_15 [1] : vector<128x32xf32> to vector<128xf32>
    %42 = vector.shape_cast %41 : vector<128xf32> to vector<128x1xf32>
    %43 = tpu.concatenate %10, %14, %18, %22, %26, %30, %34, %38, %42 in 1 : vector<128x1xf32>, vector<128x1xf32>, vector<128x1xf32>, vector<128x1xf32>, vector<128x1xf32>, vector<128x1xf32>, vector<128x1xf32>, vector<128x1xf32>, vector<128x1xf32> -> vector<128x9xf32>
    %cst_16 = arith.constant 0.176776692 : f32
    %44 = vector.broadcast %cst_16 : f32 to vector<128x9xf32>
    %45 = arith.mulf %43, %44 : vector<128x9xf32>
    %cst_17 = arith.constant dense<0xFF800000> : vector<128xf32>
    %46 = vector.multi_reduction <maximumf>, %45, %cst_17 [1] : vector<128x9xf32> to vector<128xf32>
    %47 = vector.shape_cast %46 : vector<128xf32> to vector<128x1xf32>
    %48 = vector.broadcast %47 : vector<128x1xf32> to vector<128x9xf32>
    %49 = arith.subf %45, %48 : vector<128x9xf32>
    %50 = math.exp %49 : vector<128x9xf32>
    %cst_18 = arith.constant dense<0.000000e+00> : vector<128xf32>
    %51 = vector.multi_reduction <add>, %50, %cst_18 [1] : vector<128x9xf32> to vector<128xf32>
    %52 = vector.shape_cast %51 : vector<128xf32> to vector<128x1xf32>
    %53 = tpu.reciprocal %52 {approx = true} : vector<128x1xf32> -> vector<128x1xf32>
    %54 = vector.broadcast %53 : vector<128x1xf32> to vector<128x9xf32>
    %55 = arith.mulf %50, %54 : vector<128x9xf32>
    %c0_19 = arith.constant 0 : index
    %c0_20 = arith.constant 0 : index
    %56 = vector.load %arg3[%c0_19, %c0_20] : memref<128x9xf32, #tpu.memory_space<vmem>>, vector<128x9xf32>
    %57 = arith.mulf %55, %56 : vector<128x9xf32>
    %cst_21 = arith.constant 1.000000e+00 : f32
    %58 = vector.broadcast %cst_21 : f32 to vector<1x9xf32>
    %59 = tpu.transpose %57, [1, 0] : vector<128x9xf32> -> vector<9x128xf32>
    %cst_22 = arith.constant dense<0.000000e+00> : vector<1x128xf32>
    %60 = tpu.matmul %58, %59, %cst_22 {dimension_numbers = #tpu.dot_dimension_numbers<[1], [0], [0], [1], [0, 0, 1, 1], [], []>} : vector<1x9xf32>, vector<9x128xf32>, vector<1x128xf32> -> vector<1x128xf32>
    %c0_23 = arith.constant 0 : index
    %c0_24 = arith.constant 0 : index
    %61 = vector.load %arg6[%c0_23, %c0_24] : memref<1x128xf32, #tpu.memory_space<vmem>>, vector<1x128xf32>
    tpu.vector_store %arg6[%c0_23, %c0_24], %60 {strides = array<i32>} : memref<1x128xf32, #tpu.memory_space<vmem>>, vector<1x128xf32>,
    return
  }
  func.func @transform_0(%arg0: i32) -> (i32, i32) {
    %c0_i32 = arith.constant 0 : i32
    %c0_i32_0 = arith.constant 0 : i32
    return %arg0, %c0_i32 : i32, i32
  }
  func.func @transform_1(%arg0: i32) -> (i32, i32) {
    %c0_i32 = arith.constant 0 : i32
    %c0_i32_0 = arith.constant 0 : i32
    return %arg0, %c0_i32 : i32, i32
  }
  func.func @transform_2(%arg0: i32) -> (i32, i32) {
    %c0_i32 = arith.constant 0 : i32
    %c0_i32_0 = arith.constant 0 : i32
    return %arg0, %c0_i32 : i32, i32
  }
  func.func @transform_3(%arg0: i32) -> (i32, i32) {
    %c0_i32 = arith.constant 0 : i32
    %c0_i32_0 = arith.constant 0 : i32
    %c0_i32_1 = arith.constant 0 : i32
    return %c0_i32, %c0_i32_0 : i32, i32
  }
  func.func @transform_4(%arg0: i32) -> (i32, i32) {
    %c0_i32 = arith.constant 0 : i32
    %c0_i32_0 = arith.constant 0 : i32
    %c0_i32_1 = arith.constant 0 : i32
    return %c0_i32, %c0_i32_0 : i32, i32
  }
  func.func @transform_5(%arg0: i32) -> (i32, i32) {
    %c0_i32 = arith.constant 0 : i32
    %c0_i32_0 = arith.constant 0 : i32
    return %c0_i32, %arg0 : i32, i32
  }
}

</mosaic_0001>

<bundles_post_ra>
// kernel: tpu_custom_call.1
= control target key start
LH: loop header
LB: loop body
LE: loop exit
PB: predicated region body
PF: predicated region fallthrough
CT: control target
= control target key end

     0   :  { %s1914_s24 = smov 96   ;;  %vm48_vm0 = vcmask 261120   ;;  %s3593_s0 = inlined_call_operand.vmem [shape: f32[128,32], index: 0, kind: input, shape index: {}]   ;;  %s3594_s1 = inlined_call_operand.vmem [shape: f32[128,288], index: 1, kind: input, shape index: {}]   ;;  %s3595_s2 = inlined_call_operand.vmem [shape: f32[128,9], index: 2, kind: input, shape index: {}]   ;;  %s3596_s3 = inlined_call_operand.vmem [shape: f32[32,32], index: 3, kind: input, shape index: {}]   ;;  %s3597_s4 = inlined_call_operand.vmem [shape: f32[1,32], index: 4, kind: input, shape index: {}]   ;;  %s3598_s5 = inlined_call_operand.hbm [shape: f32[1,128], index: 5, kind: output, shape index: {}]  }
   0x1   :  { %v1954_v0 = vld [vmem:[%s3594_s1 + $0x18] sm:$0xff]  ;;  %v1959_v1 = vld [vmem:[%s3594_s1] sm:$0xff]  ;;  %v39_v3 = vld [vmem:[%s3596_s3 + $0x10] sm:$0xff] }
   0x2   :  { %v40_v2 = vld [vmem:[%s3596_s3 + $0x18] sm:$0xff]  ;;  %372 = vrot.lane.b32.xlu1 %v1954_v0, %s1914_s24  ;;  %370 = vrot.lane.b32.xlu0 %v1959_v1, %s1914_s24  ;;  %v1974_v4 = vld [vmem:[%s3594_s1 + $0x30] sm:$0xff] }
   0x3   :  { %1754 = vmatprep.subr.mxu0 %v40_v2  ;;  %v1979_v5 = vld [vmem:[%s3594_s1 + $0x60] sm:$0xff]  ;;  %v38_v6 = vld [vmem:[%s3596_s3 + $0x8] sm:$0xff]  ;;  %v2003_v10 = vld [vmem:[%s3594_s1 + $0x90] sm:$0xff] }
   0x4   :  { %1755 = vmatpush3.msra.mxu0 %v40_v2  ;;  %v21_v7 = vld [vmem:[%s3593_s0] sm:$0xff]  ;;  %v1998_v9 = vld [vmem:[%s3594_s1 + $0x48] sm:$0xff]  ;;  %v23_v12 = vld [vmem:[%s3593_s0 + $0x10] sm:$0xff] }
   0x5   :  { %1756 = vmatprep.subr.mxu0 %v39_v3  ;;  %1762 = vmatprep.mubr.msk.f32.mxu0 %vm48_vm0, %v21_v7  ;;  %v37_v8 = vld [vmem:[%s3596_s3] sm:$0xff]  ;;  %v22_v11 = vld [vmem:[%s3593_s0 + $0x8] sm:$0xff]  ;;  %v2019_v13 = vld [vmem:[%s3594_s1 + $0x78] sm:$0xff] }
   0x6   :  { %1757 = vmatpush3.msra.mxu0 %v39_v3  ;;  %374 = vrot.lane.b32.xlu1 %v1974_v4, %s1914_s24  ;;  %v2025_v14 = vld [vmem:[%s3594_s1 + $0xc0] sm:$0xff]  ;;  %v24_v15 = vld [vmem:[%s3593_s0 + $0x18] sm:$0xff]  ;;  %v2041_v17 = vld [vmem:[%s3594_s1 + $0xa8] sm:$0xff] }
   0x7   :  { %378 = vrot.lane.b32.xlu0 %v1979_v5, %s1914_s24  ;;  %1758 = vmatprep.subr.mxu0 %v38_v6  ;;  %v25_v16 = vld [vmem:[%s3593_s0 + $0x20] sm:$0xff]  ;;  %v2047_v18 = vld [vmem:[%s3594_s1 + $0xf0] sm:$0xff]  ;;  %v26_v19 = vld [vmem:[%s3593_s0 + $0x28] sm:$0xff] }
   0x8   :  { %1759 = vmatpush3.msra.mxu0 %v38_v6 }
   0x9   :  { %1760 = vmatprep.subr.mxu0 %v37_v8 }
   0xa   :  { %1761 = vmatpush3.msra.mxu0 %v37_v8  ;;  %376 = vrot.lane.b32.xlu1 %v1998_v9, %s1914_s24 }
   0xb   :  { %382 = vrot.lane.b32.xlu0 %v2003_v10, %s1914_s24  ;;  %1763 = vmatmul.mubr.msk.f32.vlgmr.msra.gmra.mxu0 %vm48_vm0, %v22_v11 }
   0xc   :  { %1765 = vmatprep.mubr.msk.f32.mxu0 %vm48_vm0, %v23_v12 }
   0xe   :  { %380 = vrot.lane.b32.xlu1 %v2019_v13, %s1914_s24 }
   0xf   :  { %386 = vrot.lane.b32.xlu0 %v2025_v14, %s1914_s24  ;;  %1766 = vmatmul.mubr.msk.f32.gmra.mxu0 %vm48_vm0, %v24_v15 }
  0x10   :  { %1768 = vmatprep.mubr.msk.f32.mxu0 %vm48_vm0, %v25_v16 }
  0x11   :  { %10 = vsyncpa [#allocation3], 0  ;;  %v27_v20 = vld [vmem:[%s3593_s0 + $0x30] sm:$0xff]  ;;  %v2063_v21 = vld [vmem:[%s3594_s1 + $0xd8] sm:$0xff]  ;;  %s1915_s10 = smov 64   ;;  %s1916_s18 = smov 32  }
  0x12   :  { %384 = vrot.lane.b32.xlu1 %v2041_v17, %s1914_s24  ;;  %v2069_v22 = vld [vmem:[%s3594_s1 + $0x120] sm:$0xff]  ;;  %v28_v23 = vld [vmem:[%s3593_s0 + $0x38] sm:$0xff]  ;;  %v2085_v25 = vld [vmem:[%s3594_s1 + $0x108] sm:$0xff]  ;;  %vm1203_vm1 = vcmask 15360   ;;  %vm1186_vm2 = vcmask 7168   ;;  %vm1220_vm3 = vcmask 23552  }
  0x13   :  { %390 = vrot.lane.b32.xlu0 %v2047_v18, %s1914_s24  ;;  %1769 = vmatmul.mubr.msk.f32.gmra.mxu0 %vm48_vm0, %v26_v19  ;;  %v29_v24 = vld [vmem:[%s3593_s0 + $0x40] sm:$0xff]  ;;  %v2091_v26 = vld [vmem:[%s3594_s1 + $0x150] sm:$0xff]  ;;  %v30_v27 = vld [vmem:[%s3593_s0 + $0x48] sm:$0xff]  ;;  %vm1237_vm4 = vcmask 31744   ;;  %vm1254_vm5 = vcmask 39936   ;;  %vm1271_vm6 = vcmask 48128  }
  0x14   :  { %1771 = vmatprep.mubr.msk.f32.mxu0 %vm48_vm0, %v27_v20  ;;  %v31_v28 = vld [vmem:[%s3593_s0 + $0x50] sm:$0xff]  ;;  %v2107_v29 = vld [vmem:[%s3594_s1 + $0x138] sm:$0xff]  ;;  %v2113_v30 = vld [vmem:[%s3594_s1 + $0x168] sm:$0xff]  ;;  %vm1288_vm7 = vcmask 56320   ;;  %vm1305_vm8 = vcmask 64512   ;;  %vm1338_vm9 = vcmask 72704  }
  0x15   :  { %v32_v31 = vld [vmem:[%s3593_s0 + $0x58] sm:$0xff]  ;;  %v33_v32 = vld [vmem:[%s3593_s0 + $0x60] sm:$0xff]  ;;  %v2130_v33 = vld [vmem:[%s3594_s1 + $0x170] sm:$0xff]  ;;  %vm1918_vm10 = vmmov 0   ;;  %s1920_s29 = smov [#allocation2]  }
  0x16   :  { %388 = vrot.lane.b32.xlu1 %v2063_v21, %s1914_s24  ;;  %v34_v34 = vld [vmem:[%s3593_s0 + $0x68] sm:$0xff]  ;;  %v35_v35 = vld [vmem:[%s3593_s0 + $0x70] sm:$0xff]  ;;  %v36_v36 = vld [vmem:[%s3593_s0 + $0x78] sm:$0xff]  ;;  %s1675_s30 = sshll.u32 %s1920_s29, 4  ;;  %s1676_s30 = int_to_ptr.vmem [resolvable:$true] %s1675_s30 }
  0x17   :  { %394 = vrot.lane.b32.xlu0 %v2069_v22, %s1914_s24  ;;  %1772 = vmatmul.mubr.msk.f32.gmra.mxu0 %vm48_vm0, %v28_v23  ;;  %v2163_v37 = vld [vmem:[%s3594_s1 + $0x140] sm:$0xff]  ;;  %v2172_v38 = vld [vmem:[%s3594_s1 + $0x158] sm:$0xff]  ;;  %v2193_v39 = vld [vmem:[%s3594_s1 + $0x110] sm:$0xff]  ;;  %s1892_s6 = scalar_lea.vmem %s1676_s30, 16  ;;  %s1896_s7 = scalar_lea.vmem %s1676_s30, 32 }
  0x18   :  { %1774 = vmatprep.mubr.msk.f32.mxu0 %vm48_vm0, %v29_v24  ;;  %v2202_v40 = vld [vmem:[%s3594_s1 + $0x128] sm:$0xff]  ;;  %v2223_v41 = vld [vmem:[%s3594_s1 + $0xe0] sm:$0xff]  ;;  %v2232_v42 = vld [vmem:[%s3594_s1 + $0xf8] sm:$0xff]  ;;  %p1893_p0 = scmp.ne.s32.totalorder %s1676_s30, %s1892_s6  ;;  %p1897_p1 = scmp.lt.s32.totalorder %s1676_s30, %s1676_s30 }
  0x19   :  { %v2253_v43 = vld [vmem:[%s3594_s1 + $0xb0] sm:$0xff]  ;;  %v2262_v44 = vld [vmem:[%s3594_s1 + $0xc8] sm:$0xff]  ;;  %v2281_v46 = vld [vmem:[%s3597_s4] ss:$0 sm:$0xff]  ;;  %p1898_p2 = scmp.lt.s32.totalorder %s1896_s7, %s1892_s6 }
  0x1a   :  { %392 = vrot.lane.b32.xlu1 %v2085_v25, %s1914_s24  ;;  %3622 = vst [vmem:[#allocation5_spill] sm:$0xff] %v2253_v43 }
  0x1b   :  { %398 = vrot.lane.b32.xlu0 %v2091_v26, %s1914_s24  ;;  %1775 = vmatmul.mubr.msk.f32.gmra.mxu0 %vm48_vm0, %v30_v27  ;;  %p1899_p3 = por %p1898_p2, %p1897_p1 }
  0x1c   :  { %1777 = vmatprep.mubr.msk.f32.mxu0 %vm48_vm0, %v31_v28 }
  0x1d   :  { %p1900_p4 = pnand %p1899_p3, %p1893_p0 }
  0x1e   :  { %396 = vrot.lane.b32.xlu1 %v2107_v29, %s1914_s24 }
  0x1f   :  { %512 = vrot.lane.b32.xlu0 %v2113_v30, %s1915_s10  ;;  %1778 = vmatmul.mubr.msk.f32.gmra.mxu0 %vm48_vm0, %v32_v31 }
  0x20   :  { %1780 = vmatprep.mubr.msk.f32.mxu0 %vm48_vm0, %v33_v32 }
  0x22   :  { %400 = vrot.lane.b32.xlu1 %v2113_v30, %s1914_s24 }
  0x23   :  { %928 = vrot.lane.b32.xlu0 %v2130_v33, %s1915_s10  ;;  %1781 = vmatmul.mubr.msk.f32.gmra.mxu0 %vm48_vm0, %v34_v34 }
  0x24   :  { %1783 = vmatprep.mubr.msk.f32.mxu0 %vm48_vm0, %v35_v35 }
  0x26   :  { %624 = vrot.lane.b32.xlu1 %v2113_v30, %s1916_s18 }
  0x27   :  { %1040 = vrot.lane.b32.xlu0 %v2130_v33, %s1916_s18  ;;  %1784 = vmatmul.mubr.msk.f32.gmra.mxu0 %vm48_vm0, %v36_v36 }
  0x2a   :  { %816 = vrot.lane.b32.xlu1 %v2130_v33, %s1914_s24 }
  0x2b   :  { %508 = vrot.lane.b32.xlu0 %v2107_v29, %s1915_s10 }
  0x2e   :  { %510 = vrot.lane.b32.xlu1 %v2091_v26, %s1915_s10 }
  0x2f   :  { %620 = vrot.lane.b32.xlu0 %v2107_v29, %s1916_s18 }
  0x32   :  { %622 = vrot.lane.b32.xlu1 %v2091_v26, %s1916_s18 }
  0x33   :  { %812 = vrot.lane.b32.xlu0 %v2163_v37, %s1914_s24 }
  0x36   :  { %814 = vrot.lane.b32.xlu1 %v2172_v38, %s1914_s24 }
  0x37   :  { %924 = vrot.lane.b32.xlu0 %v2163_v37, %s1915_s10 }
  0x3a   :  { %926 = vrot.lane.b32.xlu1 %v2172_v38, %s1915_s10 }
  0x3b   :  { %1036 = vrot.lane.b32.xlu0 %v2163_v37, %s1916_s18 }
  0x3e   :  { %1038 = vrot.lane.b32.xlu1 %v2172_v38, %s1916_s18 }
  0x3f   :  { %504 = vrot.lane.b32.xlu0 %v2085_v25, %s1915_s10 }
  0x42   :  { %506 = vrot.lane.b32.xlu1 %v2069_v22, %s1915_s10 }
  0x43   :  { %616 = vrot.lane.b32.xlu0 %v2085_v25, %s1916_s18 }
  0x46   :  { %618 = vrot.lane.b32.xlu1 %v2069_v22, %s1916_s18 }
  0x47   :  { %808 = vrot.lane.b32.xlu0 %v2193_v39, %s1914_s24 }
  0x4a   :  { %810 = vrot.lane.b32.xlu1 %v2202_v40, %s1914_s24 }
  0x4b   :  { %920 = vrot.lane.b32.xlu0 %v2193_v39, %s1915_s10 }
  0x4e   :  { %922 = vrot.lane.b32.xlu1 %v2202_v40, %s1915_s10 }
  0x4f   :  { %1032 = vrot.lane.b32.xlu0 %v2193_v39, %s1916_s18 }
  0x52   :  { %1034 = vrot.lane.b32.xlu1 %v2202_v40, %s1916_s18 }
  0x53   :  { %500 = vrot.lane.b32.xlu0 %v2063_v21, %s1915_s10 }
  0x56   :  { %502 = vrot.lane.b32.xlu1 %v2047_v18, %s1915_s10 }
  0x57   :  { %612 = vrot.lane.b32.xlu0 %v2063_v21, %s1916_s18 }
  0x5a   :  { %614 = vrot.lane.b32.xlu1 %v2047_v18, %s1916_s18 }
  0x5b   :  { %804 = vrot.lane.b32.xlu0 %v2223_v41, %s1914_s24 }
  0x5e   :  { %806 = vrot.lane.b32.xlu1 %v2232_v42, %s1914_s24 }
  0x5f   :  { %916 = vrot.lane.b32.xlu0 %v2223_v41, %s1915_s10 }
  0x62   :  { %918 = vrot.lane.b32.xlu1 %v2232_v42, %s1915_s10 }
  0x63   :  { %1028 = vrot.lane.b32.xlu0 %v2223_v41, %s1916_s18 }
  0x66   :  { %1030 = vrot.lane.b32.xlu1 %v2232_v42, %s1916_s18 }
  0x67   :  { %496 = vrot.lane.b32.xlu0 %v2041_v17, %s1915_s10 }
  0x6a   :  { %498 = vrot.lane.b32.xlu1 %v2025_v14, %s1915_s10 }
  0x6b   :  { %608 = vrot.lane.b32.xlu0 %v2041_v17, %s1916_s18 }
  0x6e   :  { %610 = vrot.lane.b32.xlu1 %v2025_v14, %s1916_s18 }
  0x6f   :  { %800 = vrot.lane.b32.xlu0 %v2253_v43, %s1914_s24 }
  0x72   :  { %802 = vrot.lane.b32.xlu1 %v2262_v44, %s1914_s24 }
  0x73   :  { %912 = vrot.lane.b32.xlu0 %v2253_v43, %s1915_s10 }
  0x74   :  { %v373_v45 = vpop.permute.xlu1 %372  ;;  %v371_v60 = vpop.permute.xlu0 %370 }
  0x76   :  { %914 = vrot.lane.b32.xlu1 %v2262_v44, %s1915_s10 }
  0x77   :  { %1024 = vrot.lane.b32.xlu0 %v2253_v43, %s1916_s18 }
  0x78   :  { %v375_v53 = vpop.permute.xlu1 %374 }
  0x7a   :  { %1026 = vrot.lane.b32.xlu1 %v2262_v44, %s1916_s18 }
  0x7c   :  { %v377_v11 = vpop.permute.xlu1 %376 }
  0x7e   :  { %494 = vrot.lane.b32.xlu1 %v2003_v10, %s1915_s10 }
  0x80   :  { %v381_v28 = vpop.permute.xlu1 %380 }
  0x82   :  { %606 = vrot.lane.b32.xlu1 %v2003_v10, %s1916_s18 }
  0xcb   :  { %v1764_v47 = vpop.f32.mrf.mxu0 }
  0xcc   :  { %v2284_v48 = vadd.f32 %v1764_v47, %v2281_v46 }
  0xcd   :  { %v163_v49 = vpop.f32.mrf.mxu0 }
  0xce   :  { %3623 = vst [vmem:[#allocation6_spill] sm:$0xff] %v2284_v48  ;;  %v2287_v50 = vadd.f32 %v2281_v46, %v163_v49  ;;  %v419_v51 = vmul.f32 %v373_v45, %v2284_v48  ;;  %v291_v52 = vmul.f32 %v1954_v0, %v2284_v48 }
  0xcf   :  { %v1767_v54 = vpop.f32.mrf.mxu0 }
  0xd0   :  { %3624 = vst [vmem:[#allocation7_spill] sm:$0xff] %v2287_v50  ;;  %v2293_v55 = vadd.f32 %v1767_v54, %v2281_v46  ;;  %v437_v56 = vsel %vm48_vm0, %v419_v51, 0.0  ;;  %v309_v57 = vsel %vm48_vm0, %v291_v52, 0.0  ;;  %v290_v58 = vmul.f32 %v1959_v1, %v2287_v50 }
  0xd1   :  { %438 = vadd.xlane.f32.xlu1 %v437_v56  ;;  %310 = vadd.xlane.f32.xlu0 %v309_v57  ;;  %v173_v59 = vpop.f32.mrf.mxu0  ;;  %v418_v2 = vmul.f32 %v371_v60, %v2287_v50  ;;  %v379_v57 = vpop.permute.xlu0 %378 }
  0xd2   :  { %3625 = vst [vmem:[#allocation8_spill] sm:$0xff] %v2293_v55  ;;  %v2300_v61 = vadd.f32 %v2281_v46, %v173_v59  ;;  %v293_v62 = vmul.f32 %v1998_v9, %v2293_v55  ;;  %v306_v7 = vsel %vm48_vm0, %v290_v58, 0.0  ;;  %v421_v23 = vmul.f32 %v377_v11, %v2293_v55  ;;  %v385_v58 = vpop.permute.xlu1 %384 }
  0xd3   :  { %v1770_v63 = vpop.f32.mrf.mxu0  ;;  %v434_v20 = vsel %vm48_vm0, %v418_v2, 0.0 }
  0xd4   :  { %3626 = vst [vmem:[#allocation9_spill] sm:$0xff] %v2300_v61  ;;  %v2306_v3 = vadd.f32 %v1770_v63, %v2281_v46  ;;  %v315_v6 = vsel %vm48_vm0, %v293_v62, 0.0  ;;  %v292_v8 = vmul.f32 %v1974_v4, %v2300_v61  ;;  %v443_v34 = vsel %vm48_vm0, %v421_v23, 0.0 }
  0xd5   :  { %316 = vadd.xlane.f32.xlu1 %v315_v6  ;;  %v183_v12 = vpop.f32.mrf.mxu0  ;;  %307 = vadd.xlane.f32.xlu0 %v306_v7  ;;  %v420_v36 = vmul.f32 %v375_v53, %v2300_v61 }
  0xd6   :  { %3627 = vst [vmem:[#allocation10_spill] sm:$0xff] %v2306_v3  ;;  %v312_v15 = vsel %vm48_vm0, %v292_v8, 0.0  ;;  %v295_v16 = vmul.f32 %v2019_v13, %v2306_v3  ;;  %v423_v35 = vmul.f32 %v381_v28, %v2306_v3  ;;  %v2325_v47 = vadd.f32 %v2281_v46, %v183_v12 }
  0xd7   :  { %v1773_v19 = vpop.f32.mrf.mxu0  ;;  %v440_v52 = vsel %vm48_vm0, %v420_v36, 0.0 }
  0xd8   :  { %v321_v27 = vsel %vm48_vm0, %v295_v16, 0.0  ;;  %v2319_v32 = vadd.f32 %v1773_v19, %v2281_v46  ;;  %3629 = vst [vmem:[#allocation12_spill] sm:$0xff] %v2325_v47  ;;  %v449_v51 = vsel %vm48_vm0, %v423_v35, 0.0  ;;  %v294_v54 = vmul.f32 %v1979_v5, %v2325_v47  ;;  %v383_v16 = vpop.permute.xlu0 %382  ;;  %v389_v19 = vpop.permute.xlu1 %388 }
  0xd9   :  { %v193_v24 = vpop.f32.mrf.mxu0  ;;  %313 = vadd.xlane.f32.xlu1 %v312_v15  ;;  %435 = vadd.xlane.f32.xlu0 %v434_v20  ;;  %v422_v62 = vmul.f32 %v379_v57, %v2325_v47 }
  0xda   :  { %3628 = vst [vmem:[#allocation11_spill] sm:$0xff] %v2319_v32  ;;  %v297_v49 = vmul.f32 %v2041_v17, %v2319_v32  ;;  %v318_v60 = vsel %vm48_vm0, %v294_v54, 0.0  ;;  %v425_v17 = vmul.f32 %v385_v58, %v2319_v32  ;;  %v2341_v2 = vadd.f32 %v2281_v46, %v193_v24 }
  0xdb   :  { %v1776_v31 = vpop.f32.mrf.mxu0  ;;  %v446_v8 = vsel %vm48_vm0, %v422_v62, 0.0 }
  0xdc   :  { %v327_v53 = vsel %vm48_vm0, %v297_v49, 0.0  ;;  %v2335_v59 = vadd.f32 %v1776_v31, %v2281_v46  ;;  %3630 = vst [vmem:[#allocation13_spill] sm:$0xff] %v2341_v2  ;;  %v455_v7 = vsel %vm48_vm0, %v425_v17, 0.0  ;;  %v296_v11 = vmul.f32 %v2003_v10, %v2341_v2 }
  0xdd   :  { %v203_v45 = vpop.f32.mrf.mxu0  ;;  %322 = vadd.xlane.f32.xlu1 %v321_v27  ;;  %444 = vadd.xlane.f32.xlu0 %v443_v34  ;;  %v424_v24 = vmul.f32 %v383_v16, %v2341_v2  ;;  %v2429_v16 = vld [vmem:[%s3594_s1 + $0x68] sm:$0xff] }
  0xde   :  { %v299_v6 = vmul.f32 %v2063_v21, %v2335_v59  ;;  %v324_v23 = vsel %vm48_vm0, %v296_v11, 0.0  ;;  %v427_v21 = vmul.f32 %v389_v19, %v2335_v59  ;;  %v2357_v10 = vadd.f32 %v2281_v46, %v203_v45  ;;  %3632 = vst [vmem:[#allocation15_spill] sm:$0xff] %v2429_v16  ;;  %v2436_v19 = vld [vmem:[%s3594_s1 + $0x80] sm:$0xff] }
  0xdf   :  { %v1779_v56 = vpop.f32.mrf.mxu0  ;;  %v452_v35 = vsel %vm48_vm0, %v424_v24, 0.0  ;;  %3633 = vst [vmem:[#allocation16_spill] sm:$0xff] %v2436_v19  ;;  %v2467_v24 = vld [vmem:[%s3594_s1 + $0x38] sm:$0xff] }
  0xe0   :  { %v333_v15 = vsel %vm48_vm0, %v299_v6, 0.0  ;;  %v2351_v20 = vadd.f32 %v1779_v56, %v2281_v46  ;;  %v461_v34 = vsel %vm48_vm0, %v427_v21, 0.0  ;;  %v298_v36 = vmul.f32 %v2025_v14, %v2357_v10  ;;  %3634 = vst [vmem:[#allocation17_spill] sm:$0xff] %v2467_v24 }
  0xe1   :  { %450 = vadd.xlane.f32.xlu1 %v449_v51  ;;  %441 = vadd.xlane.f32.xlu0 %v440_v52  ;;  %v213_v63 = vpop.f32.mrf.mxu0  ;;  %v387_v52 = vpop.permute.xlu0 %386 }
  0xe2   :  { %v301_v28 = vmul.f32 %v2085_v25, %v2351_v20  ;;  %v330_v54 = vsel %vm48_vm0, %v298_v36, 0.0  ;;  %v426_v56 = vmul.f32 %v387_v52, %v2357_v10  ;;  %v2377_v14 = vadd.f32 %v2281_v46, %v213_v63 }
  0xe3   :  { %v1782_v12 = vpop.f32.mrf.mxu0 }
  0xe4   :  { %v2362_v31 = vadd.f32 %v1782_v12, %v2281_v46  ;;  %v339_v51 = vsel %vm48_vm0, %v301_v28, 0.0  ;;  %v300_v58 = vmul.f32 %v2047_v18, %v2377_v14 }
  0xe5   :  { %328 = vadd.xlane.f32.xlu1 %v327_v53  ;;  %319 = vadd.xlane.f32.xlu0 %v318_v60  ;;  %v223_v27 = vpop.f32.mrf.mxu0  ;;  %v2399_v11 = vpop.permute.xlu0 %390 }
  0xe6   :  { %v303_v45 = vmul.f32 %v2107_v29, %v2362_v31  ;;  %v458_v29 = vsel %vm48_vm0, %v426_v56, 0.0  ;;  %v2386_v60 = vadd.f32 %v2281_v46, %v223_v27  ;;  %v336_v63 = vsel %vm48_vm0, %v300_v58, 0.0  ;;  %v2474_v27 = vld [vmem:[%s3594_s1 + $0x50] sm:$0xff] }
  0xe7   :  { %v1785_v49 = vpop.f32.mrf.mxu0  ;;  %3635 = vst [vmem:[#allocation18_spill] sm:$0xff] %v2474_v27 }
  0xe8   :  { %v2372_v25 = vadd.f32 %v1785_v49, %v2281_v46  ;;  %v345_v53 = vsel %vm48_vm0, %v303_v45, 0.0  ;;  %v302_v6 = vmul.f32 %v2069_v22, %v2386_v60  ;;  %v2406_v22 = vld [vmem:[%s3594_s1 + $0x98] sm:$0xff]  ;;  %v2503_v45 = vld [vmem:[%s3594_s1 + $0x20] sm:$0xff] }
  0xe9   :  { %456 = vadd.xlane.f32.xlu1 %v455_v7  ;;  %447 = vadd.xlane.f32.xlu0 %v446_v8  ;;  %v233_v62 = vpop.f32.mrf.mxu0  ;;  %v2401_v12 = vpop.permute.xlu0 %394  ;;  %3631 = vst [vmem:[#allocation14_spill] sm:$0xff] %v2406_v22  ;;  %3636 = vst [vmem:[#allocation19_spill] sm:$0xff] %v2503_v45 }
  0xea   :  { %v305_v57 = vmul.f32 %v2113_v30, %v2372_v25  ;;  %v2393_v30 = vadd.f32 %v2281_v46, %v233_v62  ;;  %v342_v18 = vsel %vm48_vm0, %v302_v6, 0.0 }
  0xec   :  { %v351_v17 = vsel %vm48_vm0, %v305_v57, 0.0  ;;  %v304_v7 = vmul.f32 %v2091_v26, %v2393_v30 }
  0xed   :  { %334 = vadd.xlane.f32.xlu1 %v333_v15  ;;  %325 = vadd.xlane.f32.xlu0 %v324_v23  ;;  %v2412_v26 = vpop.permute.xlu0 %398  ;;  %v2456_v23 = vpop.permute.xlu1 %392 }
  0xee   :  { %v348_v8 = vsel %vm48_vm0, %v304_v7, 0.0 }
  0xf1   :  { %462 = vadd.xlane.f32.xlu1 %v461_v34  ;;  %453 = vadd.xlane.f32.xlu0 %v452_v35  ;;  %v513_v46 = vpop.permute.xlu0 %512  ;;  %v2476_v28 = vpop.permute.xlu1 %396 }
  0xf5   :  { %340 = vadd.xlane.f32.xlu1 %v339_v51  ;;  %331 = vadd.xlane.f32.xlu0 %v330_v54  ;;  %v2422_v15 = vpop.permute.xlu0 %928 }
  0xf9   :  { %346 = vadd.xlane.f32.xlu1 %v345_v53  ;;  %459 = vadd.xlane.f32.xlu0 %v458_v29 }
  0xfd   :  { %352 = vadd.xlane.f32.xlu1 %v351_v17  ;;  %337 = vadd.xlane.f32.xlu0 %v336_v63 }
 0x101   :  { %343 = vadd.xlane.f32.xlu0 %v342_v18 }
 0x105   :  { %349 = vadd.xlane.f32.xlu0 %v348_v8  ;;  %v545_v8 = vmul.f32 %v513_v46, %v2372_v25 }
 0x107   :  { %v591_v50 = vsel %vm48_vm0, %v545_v8, 0.0 }
 0x10e   :  { %798 = vrot.lane.b32.xlu1 %v2406_v22, %s1914_s24 }
 0x112   :  { %910 = vrot.lane.b32.xlu1 %v2406_v22, %s1915_s10 }
 0x116   :  { %1022 = vrot.lane.b32.xlu1 %v2406_v22, %s1916_s18 }
 0x11a   :  { %490 = vrot.lane.b32.xlu1 %v1979_v5, %s1915_s10 }
 0x11b   :  { %492 = vrot.lane.b32.xlu0 %v2019_v13, %s1915_s10 }
 0x11e   :  { %602 = vrot.lane.b32.xlu1 %v1979_v5, %s1916_s18  ;;  %v2440_v5 = vpop.permute.xlu0 %1040 }
 0x11f   :  { %604 = vrot.lane.b32.xlu0 %v2019_v13, %s1916_s18 }
 0x122   :  { %794 = vrot.lane.b32.xlu1 %v2429_v16, %s1914_s24  ;;  %v2448_v13 = vpop.permute.xlu0 %508 }
 0x123   :  { %796 = vrot.lane.b32.xlu0 %v2436_v19, %s1914_s24 }
 0x126   :  { %906 = vrot.lane.b32.xlu1 %v2429_v16, %s1915_s10  ;;  %v2458_v21 = vpop.permute.xlu0 %620 }
 0x127   :  { %908 = vrot.lane.b32.xlu0 %v2436_v19, %s1915_s10 }
 0x12a   :  { %1018 = vrot.lane.b32.xlu1 %v2429_v16, %s1916_s18  ;;  %v2478_v34 = vpop.permute.xlu0 %812 }
 0x12b   :  { %1020 = vrot.lane.b32.xlu0 %v2436_v19, %s1916_s18 }
 0x12e   :  { %486 = vrot.lane.b32.xlu1 %v1974_v4, %s1915_s10 }
 0x12f   :  { %488 = vrot.lane.b32.xlu0 %v1998_v9, %s1915_s10 }
 0x132   :  { %598 = vrot.lane.b32.xlu1 %v1974_v4, %s1916_s18  ;;  %v401_v4 = vpop.permute.xlu1 %400 }
 0x133   :  { %600 = vrot.lane.b32.xlu0 %v1998_v9, %s1916_s18  ;;  %v2486_v9 = vpop.permute.xlu0 %924  ;;  %v433_v29 = vmul.f32 %v401_v4, %v2372_v25 }
 0x135   :  { %v479_v62 = vsel %vm48_vm0, %v433_v29, 0.0 }
 0x136   :  { %790 = vrot.lane.b32.xlu1 %v2467_v24, %s1914_s24  ;;  %v625_v35 = vpop.permute.xlu1 %624 }
 0x137   :  { %792 = vrot.lane.b32.xlu0 %v2474_v27, %s1914_s24  ;;  %v2492_v36 = vpop.permute.xlu0 %1036  ;;  %v657_v16 = vmul.f32 %v625_v35, %v2372_v25 }
 0x139   :  { %v703_v19 = vsel %vm48_vm0, %v657_v16, 0.0  ;;  %v432_v16 = vmul.f32 %v2412_v26, %v2393_v30 }
 0x13a   :  { %902 = vrot.lane.b32.xlu1 %v2467_v24, %s1915_s10  ;;  %v817_v49 = vpop.permute.xlu1 %816 }
 0x13b   :  { %904 = vrot.lane.b32.xlu0 %v2474_v27, %s1915_s10  ;;  %v2498_v51 = vpop.permute.xlu0 %504 }
 0x13e   :  { %1014 = vrot.lane.b32.xlu1 %v2467_v24, %s1916_s18  ;;  %v2507_v52 = vpop.permute.xlu1 %510 }
 0x13f   :  { %1016 = vrot.lane.b32.xlu0 %v2474_v27, %s1916_s18  ;;  %v2509_v54 = vpop.permute.xlu0 %616 }
 0x143   :  { %484 = vrot.lane.b32.xlu0 %v1954_v0, %s1915_s10  ;;  %v2517_v56 = vpop.permute.xlu0 %808 }
 0x147   :  { %596 = vrot.lane.b32.xlu0 %v1954_v0, %s1916_s18  ;;  %v2515_v0 = vpop.permute.xlu1 %622  ;;  %v2521_v57 = vpop.permute.xlu0 %920 }
 0x14b   :  { %788 = vrot.lane.b32.xlu0 %v2503_v45, %s1914_s24  ;;  %v2519_v53 = vpop.permute.xlu1 %814  ;;  %v2526_v17 = vpop.permute.xlu0 %1032 }
 0x14f   :  { %482 = vrot.lane.b32.xlu0 %v1959_v1, %s1915_s10  ;;  %v2524_v58 = vpop.permute.xlu1 %926  ;;  %v2531_v6 = vpop.permute.xlu0 %500 }
 0x153   :  { %900 = vrot.lane.b32.xlu0 %v2503_v45, %s1915_s10  ;;  %v2529_v63 = vpop.permute.xlu1 %1038  ;;  %v2535_v7 = vpop.permute.xlu0 %612 }
 0x157   :  { %v2533_v18 = vpop.permute.xlu1 %506  ;;  %v2541_v48 = vpop.permute.xlu0 %804 }
 0x15b   :  { %v2539_v4 = vpop.permute.xlu1 %618 }
 0x15f   :  { %v2545_v29 = vpop.permute.xlu1 %810 }
 0x162   :  { %480 = vadd.xlane.f32.xlu1 %v479_v62  ;;  %v2547_v62 = vpop.permute.xlu0 %916 }
 0x163   :  { %v2549_v24 = vpop.permute.xlu1 %922 }
 0x166   :  { %v2551_v27 = vpop.permute.xlu0 %1028 }
 0x167   :  { %3637 = vst [vmem:[#allocation20_spill] sm:$0xff] %v2551_v27  ;;  %v2553_v61 = vpop.permute.xlu1 %1034 }
 0x16a   :  { %v2555_v46 = vpop.permute.xlu0 %496 }
 0x16b   :  { %3638 = vst [vmem:[#allocation21_spill] sm:$0xff] %v2555_v46 }
 0x16e   :  { %v2561_v8 = vpop.permute.xlu0 %608 }
 0x16f   :  { %3639 = vst [vmem:[#allocation22_spill] sm:$0xff] %v2561_v8  ;;  %v721_v8 = vmul.f32 %v2130_v33, %v2372_v25  ;;  %v476_v33 = vsel %vm48_vm0, %v432_v16, 0.0 }
 0x171   :  { %v767_v35 = vsel %vm48_vm0, %v721_v8, 0.0  ;;  %v849_v8 = vmul.f32 %v817_v49, %v2372_v25 }
 0x172   :  { %592 = vadd.xlane.f32.xlu0 %v591_v50  ;;  %v2559_v50 = vpop.permute.xlu1 %502  ;;  %v2565_v55 = vpop.permute.xlu0 %800 }
 0x173   :  { %594 = vrot.lane.b32.xlu1 %v1959_v1, %s1916_s18  ;;  %3640 = vst [vmem:[#allocation23_spill] sm:$0xff] %v2565_v55  ;;  %v895_v26 = vsel %vm48_vm0, %v849_v8, 0.0  ;;  %v544_v8 = vmul.f32 %v2507_v52, %v2393_v30 }
 0x176   :  { %v2563_v1 = vpop.permute.xlu1 %614  ;;  %v2571_v3 = vpop.permute.xlu0 %912 }
 0x177   :  { %3641 = vst [vmem:[#allocation24_spill] sm:$0xff] %v2571_v3 }
 0x17a   :  { %v2569_v47 = vpop.permute.xlu1 %806 }
 0x17e   :  { %v2573_v22 = vpop.permute.xlu1 %918 }
 0x182   :  { %v2581_v2 = vpop.permute.xlu1 %1030 }
 0x188   :  { %1012 = vrot.lane.b32.xlu0 %v2503_v45, %s1916_s18  ;;  %v2575_v45 = vpop.permute.xlu0 %1024 }
 0x189   :  { %3642 = vst [vmem:[#allocation25_spill] sm:$0xff] %v2575_v45 }
 0x18c   :  { %v2577_v43 = vpop.xlane.xlu0 %310 }
 0x18d   :  { %3643 = vst [vmem:[#allocation26_spill] sm:$0xff] %v2577_v43  ;;  %v2595_v43 = vpop.permute.xlu1 %498 }
 0x190   :  { %v2586_v55 = vpop.xlane.xlu0 %307 }
 0x191   :  { %3644 = vst [vmem:[#allocation27_spill] sm:$0xff] %v2586_v55 }
 0x194   :  { %v2599_v45 = vpop.xlane.xlu0 %435 }
 0x195   :  { %3645 = vst [vmem:[#allocation28_spill] sm:$0xff] %v2599_v45  ;;  %v588_v45 = vsel %vm48_vm0, %v544_v8, 0.0 }
 0x197   :  { %704 = vadd.xlane.f32.xlu1 %v703_v19  ;;  %v2591_v19 = vld [vmem:[%s3594_s1 + $0x8] sm:$0xff] }
 0x198   :  { %v2604_v55 = vpop.xlane.xlu0 %444 }
 0x199   :  { %3646 = vst [vmem:[#allocation29_spill] sm:$0xff] %v2604_v55 }
 0x19c   :  { %v2608_v46 = vpop.xlane.xlu0 %441 }
 0x19d   :  { %3647 = vst [vmem:[#allocation30_spill] sm:$0xff] %v2608_v46 }
 0x1a0   :  { %v2612_v27 = vpop.xlane.xlu0 %319 }
 0x1a1   :  { %3649 = vst [vmem:[#allocation32_spill] sm:$0xff] %v2612_v27 }
 0x1a4   :  { %v2616_v49 = vpop.xlane.xlu0 %447 }
 0x1a5   :  { %3651 = vst [vmem:[#allocation34_spill] sm:$0xff] %v2616_v49 }
 0x1a7   :  { %768 = vadd.xlane.f32.xlu0 %v767_v35  ;;  %v2602_v35 = vpop.permute.xlu1 %610 }
 0x1a8   :  { %786 = vrot.lane.b32.xlu1 %v2591_v19, %s1914_s24 }
 0x1ab   :  { %477 = vadd.xlane.f32.xlu0 %v476_v33  ;;  %v2606_v3 = vpop.permute.xlu1 %802 }
 0x1af   :  { %896 = vadd.xlane.f32.xlu0 %v895_v26  ;;  %v2610_v32 = vpop.permute.xlu1 %914  ;;  %v2624_v26 = vpop.xlane.xlu0 %325 }
 0x1b0   :  { %3648 = vst [vmem:[#allocation31_spill] sm:$0xff] %v2610_v32  ;;  %3653 = vst [vmem:[#allocation36_spill] sm:$0xff] %v2624_v26  ;;  %v1073_v26 = vmul.f32 %v2440_v5, %v2372_v25 }
 0x1b3   :  { %v2614_v16 = vpop.permute.xlu1 %1026  ;;  %v2631_v27 = vpop.xlane.xlu0 %453 }
 0x1b4   :  { %3650 = vst [vmem:[#allocation33_spill] sm:$0xff] %v2614_v16  ;;  %3655 = vst [vmem:[#allocation38_spill] sm:$0xff] %v2631_v27 }
 0x1b7   :  { %v2620_v33 = vpop.permute.xlu1 %494  ;;  %v2635_v16 = vpop.xlane.xlu0 %331 }
 0x1b8   :  { %3652 = vst [vmem:[#allocation35_spill] sm:$0xff] %v2620_v33  ;;  %3657 = vst [vmem:[#allocation40_spill] sm:$0xff] %v2635_v16 }
 0x1bb   :  { %v2627_v46 = vpop.permute.xlu1 %606  ;;  %v2639_v33 = vpop.xlane.xlu0 %459 }
 0x1bf   :  { %v2629_v55 = vpop.xlane.xlu1 %438  ;;  %v2647_v8 = vpop.xlane.xlu0 %337 }
 0x1c0   :  { %3654 = vst [vmem:[#allocation37_spill] sm:$0xff] %v2629_v55 }
 0x1c3   :  { %v2633_v49 = vpop.xlane.xlu1 %316 }
 0x1c4   :  { %3656 = vst [vmem:[#allocation39_spill] sm:$0xff] %v2633_v49  ;;  %v656_v49 = vmul.f32 %v2515_v0, %v2393_v30 }
 0x1c5   :  { %898 = vrot.lane.b32.xlu0 %v2591_v19, %s1915_s10 }
 0x1c7   :  { %v2637_v32 = vpop.xlane.xlu1 %313 }
 0x1c8   :  { %3658 = vst [vmem:[#allocation41_spill] sm:$0xff] %v2637_v32  ;;  %v700_v32 = vsel %vm48_vm0, %v656_v49, 0.0 }
 0x1cb   :  { %v2645_v52 = vpop.xlane.xlu1 %322 }
 0x1cc   :  { %589 = vadd.xlane.f32.xlu1 %v588_v45  ;;  %v961_v45 = vmul.f32 %v2422_v15, %v2372_v25  ;;  %3659 = vst [vmem:[#allocation42_spill] sm:$0xff] %v2645_v52  ;;  %v289_v15 = vld [vmem:[%s3594_s1 + $0x178] sm:$0xff]  ;;  %v2660_v52 = vpop.xlane.xlu0 %343 }
 0x1cd   :  { %v1137_v16 = vmul.f32 %v289_v15, %v2372_v25 }
 0x1ce   :  { %v1007_v55 = vsel %vm48_vm0, %v961_v45, 0.0  ;;  %v1119_v45 = vsel %vm48_vm0, %v1073_v26, 0.0 }
 0x1cf   :  { %v2658_v27 = vpop.xlane.xlu1 %450  ;;  %v1183_v5 = vsel %vm48_vm0, %v1137_v16, 0.0 }
 0x1d0   :  { %3660 = vst [vmem:[#allocation43_spill] sm:$0xff] %v2658_v27  ;;  %v2666_v0 = vpop.xlane.xlu0 %349  ;;  %v848_v27 = vmul.f32 %v2519_v53, %v2393_v30  ;;  %v960_v53 = vmul.f32 %v2524_v58, %v2393_v30 }
 0x1d2   :  { %v892_v15 = vsel %vm48_vm0, %v848_v27, 0.0  ;;  %v655_v27 = vmul.f32 %v2458_v21, %v2362_v31  ;;  %v542_v21 = vmul.f32 %v2533_v18, %v2386_v60  ;;  %v286_v18 = vld [vmem:[%s3594_s1 + $0x160] sm:$0xff] }
 0x1d4   :  { %v2676_v25 = vpop.permute.xlu0 %492  ;;  %v697_v58 = vsel %vm48_vm0, %v655_v27, 0.0  ;;  %v582_v27 = vsel %vm48_vm0, %v542_v21, 0.0  ;;  %v847_v21 = vmul.f32 %v2478_v34, %v2362_v31  ;;  %v541_v34 = vmul.f32 %v2498_v51, %v2351_v20 }
 0x1dd   :  { %1010 = vrot.lane.b32.xlu1 %v2591_v19, %s1916_s18 }
 0x1e4   :  { %1008 = vadd.xlane.f32.xlu0 %v1007_v55  ;;  %v2664_v55 = vpop.xlane.xlu1 %328 }
 0x1e5   :  { %3661 = vst [vmem:[#allocation44_spill] sm:$0xff] %v2664_v55 }
 0x1e8   :  { %701 = vadd.xlane.f32.xlu0 %v700_v32  ;;  %v431_v32 = vmul.f32 %v2476_v28, %v2362_v31  ;;  %v2674_v26 = vpop.xlane.xlu1 %456  ;;  %v2683_v28 = vpop.permute.xlu0 %604 }
 0x1ea   :  { %v473_v49 = vsel %vm48_vm0, %v431_v32, 0.0  ;;  %v720_v32 = vmul.f32 %v2172_v38, %v2393_v30  ;;  %v1072_v38 = vmul.f32 %v2529_v63, %v2393_v30  ;;  %v654_v63 = vmul.f32 %v2539_v4, %v2386_v60 }
 0x1ec   :  { %1120 = vadd.xlane.f32.xlu0 %v1119_v45  ;;  %v543_v45 = vmul.f32 %v2448_v13, %v2362_v31  ;;  %v2681_v16 = vpop.xlane.xlu1 %334  ;;  %v764_v13 = vsel %vm48_vm0, %v720_v32, 0.0  ;;  %v1116_v32 = vsel %vm48_vm0, %v1072_v38, 0.0 }
 0x1f0   :  { %1184 = vadd.xlane.f32.xlu0 %v1183_v5  ;;  %v585_v5 = vsel %vm48_vm0, %v543_v45, 0.0  ;;  %v2696_v55 = vpop.xlane.xlu1 %462  ;;  %v2698_v45 = vpop.permute.xlu0 %796 }
 0x1f4   :  { %474 = vadd.xlane.f32.xlu0 %v473_v49  ;;  %v1004_v49 = vsel %vm48_vm0, %v960_v53, 0.0  ;;  %v2706_v53 = vpop.xlane.xlu1 %340 }
 0x1f8   :  { %893 = vadd.xlane.f32.xlu0 %v892_v15  ;;  %v430_v15 = vmul.f32 %v2401_v12, %v2386_v60  ;;  %v2708_v12 = vpop.permute.xlu0 %908  ;;  %v2724_v38 = vpop.xlane.xlu1 %346 }
 0x1fc   :  { %586 = vadd.xlane.f32.xlu0 %v585_v5  ;;  %v470_v5 = vsel %vm48_vm0, %v430_v15, 0.0  ;;  %v1136_v15 = vmul.f32 %v286_v18, %v2393_v30  ;;  %v429_v30 = vmul.f32 %v2456_v23, %v2351_v20  ;;  %v1071_v23 = vmul.f32 %v2492_v36, %v2362_v31 }
 0x1fe   :  { %v1180_v4 = vsel %vm48_vm0, %v1136_v15, 0.0  ;;  %v467_v18 = vsel %vm48_vm0, %v429_v30, 0.0  ;;  %v579_v15 = vsel %vm48_vm0, %v541_v34, 0.0  ;;  %v1113_v51 = vsel %vm48_vm0, %v1071_v23, 0.0 }
 0x1ff   :  { %v540_v23 = vmul.f32 %v2559_v50, %v2377_v14  ;;  %v280_v50 = vld [vmem:[%s3594_s1 + $0x130] sm:$0xff] }
 0x200   :  { %1005 = vadd.xlane.f32.xlu0 %v1004_v49  ;;  %v719_v49 = vmul.f32 %v2163_v37, %v2362_v31  ;;  %v718_v37 = vmul.f32 %v2202_v40, %v2386_v60 }
 0x201   :  { %765 = vadd.xlane.f32.xlu1 %v764_v13 }
 0x202   :  { %v761_v13 = vsel %vm48_vm0, %v719_v49, 0.0  ;;  %v2734_v49 = vpop.xlane.xlu1 %352 }
 0x204   :  { %698 = vadd.xlane.f32.xlu0 %v697_v58  ;;  %v694_v58 = vsel %vm48_vm0, %v654_v63, 0.0  ;;  %v959_v63 = vmul.f32 %v2486_v9, %v2362_v31  ;;  %v283_v9 = vld [vmem:[%s3594_s1 + $0x148] sm:$0xff] }
 0x205   :  { %471 = vadd.xlane.f32.xlu1 %v470_v5  ;;  %v2726_v5 = vpop.permute.xlu0 %1020 }
 0x208   :  { %1117 = vadd.xlane.f32.xlu0 %v1116_v32  ;;  %v758_v32 = vsel %vm48_vm0, %v718_v37, 0.0  ;;  %v2753_v37 = vpop.permute.xlu1 %798 }
 0x209   :  { %583 = vadd.xlane.f32.xlu1 %v582_v27  ;;  %v2736_v40 = vpop.permute.xlu0 %488  ;;  %v889_v27 = vsel %vm48_vm0, %v847_v21, 0.0  ;;  %v1135_v21 = vmul.f32 %v283_v9, %v2362_v31  ;;  %v428_v31 = vmul.f32 %v2399_v11, %v2377_v14  ;;  %v1070_v11 = vmul.f32 %v2553_v61, %v2386_v60 }
 0x20a   :  { %v576_v9 = vsel %vm48_vm0, %v540_v23, 0.0 }
 0x20c   :  { %762 = vadd.xlane.f32.xlu0 %v761_v13  ;;  %v1001_v13 = vsel %vm48_vm0, %v959_v63, 0.0  ;;  %v846_v63 = vmul.f32 %v2545_v29, %v2386_v60 }
 0x20d   :  { %695 = vadd.xlane.f32.xlu1 %v694_v58  ;;  %v653_v58 = vmul.f32 %v2509_v54, %v2351_v20  ;;  %v2762_v54 = vpop.permute.xlu1 %910 }
 0x20e   :  { %v886_v34 = vsel %vm48_vm0, %v846_v63, 0.0  ;;  %v845_v63 = vmul.f32 %v2517_v56, %v2351_v20  ;;  %v956_v56 = vmul.f32 %v2573_v22, %v2377_v14  ;;  %v277_v22 = vld [vmem:[%s3594_s1 + $0x118] sm:$0xff] }
 0x20f   :  { %v691_v36 = vsel %vm48_vm0, %v653_v58, 0.0 }
 0x210   :  { %1181 = vadd.xlane.f32.xlu0 %v1180_v4  ;;  %v2755_v4 = vpop.permute.xlu0 %600 }
 0x211   :  { %759 = vadd.xlane.f32.xlu1 %v758_v32  ;;  %v717_v32 = vmul.f32 %v2193_v39, %v2351_v20  ;;  %v958_v39 = vmul.f32 %v2549_v24, %v2386_v60  ;;  %v652_v24 = vmul.f32 %v2563_v1, %v2377_v14 }
 0x213   :  { %v998_v58 = vsel %vm48_vm0, %v958_v39, 0.0  ;;  %v688_v61 = vsel %vm48_vm0, %v652_v24, 0.0  ;;  %v883_v39 = vsel %vm48_vm0, %v845_v63, 0.0  ;;  %v274_v24 = vld [vmem:[%s3594_s1 + $0x100] sm:$0xff] }
 0x214   :  { %890 = vadd.xlane.f32.xlu0 %v889_v27  ;;  %v2764_v30 = vpop.permute.xlu0 %792  ;;  %v1177_v27 = vsel %vm48_vm0, %v1135_v21, 0.0 }
 0x215   :  { %468 = vadd.xlane.f32.xlu1 %v467_v18  ;;  %v755_v18 = vsel %vm48_vm0, %v717_v32, 0.0  ;;  %v1134_v32 = vmul.f32 %v280_v50, %v2386_v60 }
 0x217   :  { %v1174_v1 = vsel %vm48_vm0, %v1134_v32, 0.0  ;;  %v1132_v32 = vmul.f32 %v274_v24, %v2377_v14 }
 0x218   :  { %1002 = vadd.xlane.f32.xlu0 %v1001_v13  ;;  %v464_v13 = vsel %vm48_vm0, %v428_v31, 0.0  ;;  %v2780_v29 = vpop.permute.xlu0 %904  ;;  %v844_v31 = vmul.f32 %v2569_v47, %v2377_v14 }
 0x219   :  { %580 = vadd.xlane.f32.xlu1 %v579_v15  ;;  %v2778_v15 = vpop.permute.xlu1 %1022  ;;  %v1168_v63 = vsel %vm48_vm0, %v1132_v32, 0.0 }
 0x21c   :  { %1114 = vadd.xlane.f32.xlu0 %v1113_v51  ;;  %v2793_v21 = vpop.permute.xlu0 %1016 }
 0x21d   :  { %692 = vadd.xlane.f32.xlu1 %v691_v36  ;;  %v2791_v51 = vpop.permute.xlu1 %490  ;;  %v1110_v36 = vsel %vm48_vm0, %v1070_v11, 0.0  ;;  %v1069_v11 = vmul.f32 %v2526_v17, %v2351_v20 }
 0x21f   :  { %v1107_v50 = vsel %vm48_vm0, %v1069_v11, 0.0 }
 0x220   :  { %1178 = vadd.xlane.f32.xlu0 %v1177_v27  ;;  %v716_v27 = vmul.f32 %v2232_v42, %v2377_v14  ;;  %v2808_v60 = vpop.permute.xlu0 %484  ;;  %v957_v42 = vmul.f32 %v2521_v57, %v2351_v20  ;;  %v1068_v57 = vmul.f32 %v2581_v2, %v2377_v14 }
 0x221   :  { %756 = vadd.xlane.f32.xlu1 %v755_v18 }
 0x222   :  { %v752_v18 = vsel %vm48_vm0, %v716_v27, 0.0  ;;  %v1104_v17 = vsel %vm48_vm0, %v1068_v57, 0.0  ;;  %v842_v57 = vmul.f32 %v2606_v3, %v2357_v10 }
 0x224   :  { %887 = vadd.xlane.f32.xlu0 %v886_v34  ;;  %v2806_v34 = vpop.permute.xlu1 %602  ;;  %v2818_v47 = vpop.permute.xlu0 %596 }
 0x225   :  { %465 = vadd.xlane.f32.xlu1 %v464_v13  ;;  %v880_v13 = vsel %vm48_vm0, %v844_v31, 0.0 }
 0x228   :  { %999 = vadd.xlane.f32.xlu0 %v998_v58  ;;  %v2816_v23 = vpop.permute.xlu1 %794  ;;  %v995_v58 = vsel %vm48_vm0, %v957_v42, 0.0  ;;  %v2838_v2 = vpop.permute.xlu0 %788  ;;  %v650_v42 = vmul.f32 %v2602_v35, %v2357_v10 }
 0x229   :  { %577 = vadd.xlane.f32.xlu1 %v576_v9  ;;  %v992_v9 = vsel %vm48_vm0, %v956_v56, 0.0 }
 0x22a   :  { %v682_v56 = vsel %vm48_vm0, %v650_v42, 0.0  ;;  %v268_v42 = vld [vmem:[%s3594_s1 + $0xd0] sm:$0xff] }
 0x22c   :  { %1111 = vadd.xlane.f32.xlu0 %v1110_v36  ;;  %v1133_v36 = vmul.f32 %v277_v22, %v2351_v20  ;;  %v538_v20 = vmul.f32 %v2595_v43, %v2357_v10  ;;  %v2848_v14 = vpop.permute.xlu0 %482  ;;  %v715_v43 = vmul.f32 %v2223_v41, %v2335_v59 }
 0x22d   :  { %689 = vadd.xlane.f32.xlu1 %v688_v61  ;;  %v2836_v61 = vpop.permute.xlu1 %906 }
 0x22e   :  { %v1171_v27 = vsel %vm48_vm0, %v1133_v36, 0.0  ;;  %v749_v35 = vsel %vm48_vm0, %v715_v43, 0.0  ;;  %v3662_v36 = vld [vmem:[#allocation31_spill] sm:$0xff] }
 0x230   :  { %1175 = vadd.xlane.f32.xlu0 %v1174_v1  ;;  %v539_v1 = vmul.f32 %v2531_v6, %v2335_v59  ;;  %v570_v6 = vsel %vm48_vm0, %v538_v20, 0.0 }
 0x231   :  { %753 = vadd.xlane.f32.xlu1 %v752_v18  ;;  %v2846_v18 = vpop.permute.xlu1 %1018 }
 0x232   :  { %v573_v31 = vsel %vm48_vm0, %v539_v1, 0.0 }
 0x234   :  { %884 = vadd.xlane.f32.xlu0 %v883_v39  ;;  %v651_v39 = vmul.f32 %v2535_v7, %v2335_v59  ;;  %v2864_v7 = vpop.permute.xlu0 %900 }
 0x235   :  { %881 = vadd.xlane.f32.xlu1 %v880_v13  ;;  %v2862_v11 = vpop.permute.xlu1 %486 }
 0x236   :  { %v685_v13 = vsel %vm48_vm0, %v651_v39, 0.0 }
 0x238   :  { %996 = vadd.xlane.f32.xlu0 %v995_v58  ;;  %v714_v58 = vmul.f32 %v2262_v44, %v2357_v10  ;;  %v2872_v22 = vpop.xlane.xlu0 %592 }
 0x239   :  { %993 = vadd.xlane.f32.xlu1 %v992_v9  ;;  %v843_v9 = vmul.f32 %v2541_v48, %v2335_v59  ;;  %v2874_v44 = vpop.permute.xlu1 %598  ;;  %v874_v48 = vsel %vm48_vm0, %v842_v57, 0.0 }
 0x23a   :  { %v746_v41 = vsel %vm48_vm0, %v714_v58, 0.0  ;;  %v1130_v58 = vmul.f32 %v268_v42, %v2357_v10  ;;  %v3670_v42 = vld [vmem:[#allocation5_spill] sm:$0xff] }
 0x23b   :  { %v877_v24 = vsel %vm48_vm0, %v843_v9, 0.0  ;;  %v3666_v9 = vld [vmem:[#allocation21_spill] sm:$0xff] }
 0x23c   :  { %1108 = vadd.xlane.f32.xlu0 %v1107_v50  ;;  %v955_v50 = vmul.f32 %v2547_v62, %v2335_v59  ;;  %v2882_v3 = vpop.permute.xlu0 %1012 }
 0x23d   :  { %1105 = vadd.xlane.f32.xlu1 %v1104_v17  ;;  %v954_v17 = vmul.f32 %v3662_v36, %v2357_v10  ;;  %v2893_v39 = vpop.permute.xlu1 %790  ;;  %v3668_v36 = vld [vmem:[#allocation35_spill] sm:$0xff] }
 0x23e   :  { %v989_v32 = vsel %vm48_vm0, %v955_v50, 0.0  ;;  %v3667_v50 = vld [vmem:[#allocation13_spill] sm:$0xff] }
 0x23f   :  { %v986_v62 = vsel %vm48_vm0, %v954_v17, 0.0  ;;  %v536_v17 = vmul.f32 %v3668_v36, %v3667_v50  ;;  %v840_v36 = vmul.f32 %v2753_v37, %v3667_v50 }
 0x240   :  { %1172 = vadd.xlane.f32.xlu0 %v1171_v27  ;;  %v3663_v27 = vld [vmem:[#allocation20_spill] sm:$0xff] }
 0x241   :  { %1169 = vadd.xlane.f32.xlu1 %v1168_v63  ;;  %v1067_v1 = vmul.f32 %v3663_v27, %v2335_v59  ;;  %v3664_v63 = vld [vmem:[#allocation33_spill] sm:$0xff] }
 0x242   :  { %v1066_v20 = vmul.f32 %v3664_v63, %v2357_v10  ;;  %v564_v63 = vsel %vm48_vm0, %v536_v17, 0.0 }
 0x244   :  { %574 = vadd.xlane.f32.xlu0 %v573_v31  ;;  %v271_v31 = vld [vmem:[%s3594_s1 + $0xe8] sm:$0xff] }
 0x245   :  { %571 = vadd.xlane.f32.xlu1 %v570_v6  ;;  %v2898_v6 = vpop.xlane.xlu0 %768  ;;  %v1131_v43 = vmul.f32 %v271_v31, %v2335_v59 }
 0x248   :  { %686 = vadd.xlane.f32.xlu0 %v685_v13  ;;  %v1101_v13 = vsel %vm48_vm0, %v1067_v1, 0.0  ;;  %v648_v1 = vmul.f32 %v2627_v46, %v3667_v50  ;;  %v3672_v46 = vld [vmem:[#allocation23_spill] sm:$0xff] }
 0x249   :  { %683 = vadd.xlane.f32.xlu1 %v682_v56  ;;  %v1098_v56 = vsel %vm48_vm0, %v1066_v20, 0.0  ;;  %v2912_v59 = vpop.xlane.xlu0 %477 }
 0x24c   :  { %750 = vadd.xlane.f32.xlu0 %v749_v35  ;;  %v3665_v35 = vld [vmem:[#allocation11_spill] sm:$0xff] }
 0x24d   :  { %747 = vadd.xlane.f32.xlu1 %v746_v41  ;;  %v537_v57 = vmul.f32 %v3666_v9, %v3665_v35  ;;  %v2906_v41 = vpop.permute.xlu1 %902 }
 0x24f   :  { %v567_v27 = vsel %vm48_vm0, %v537_v57, 0.0  ;;  %v841_v57 = vmul.f32 %v3672_v46, %v3665_v35 }
 0x250   :  { %878 = vadd.xlane.f32.xlu0 %v877_v24  ;;  %v1165_v24 = vsel %vm48_vm0, %v1131_v43, 0.0  ;;  %v676_v43 = vsel %vm48_vm0, %v648_v1, 0.0 }
 0x251   :  { %875 = vadd.xlane.f32.xlu1 %v874_v48  ;;  %v1162_v48 = vsel %vm48_vm0, %v1130_v58, 0.0  ;;  %v2920_v20 = vpop.permute.xlu1 %1014  ;;  %v871_v1 = vsel %vm48_vm0, %v841_v57, 0.0  ;;  %v265_v57 = vld [vmem:[%s3594_s1 + $0xb8] sm:$0xff] }
 0x254   :  { %990 = vadd.xlane.f32.xlu0 %v989_v32  ;;  %v3669_v32 = vld [vmem:[#allocation22_spill] sm:$0xff] }
 0x255   :  { %987 = vadd.xlane.f32.xlu1 %v986_v62  ;;  %v649_v10 = vmul.f32 %v3669_v32, %v3665_v35  ;;  %v897_v62 = vpop.xlane.xlu0 %896  ;;  %v481_v9 = vpop.xlane.xlu1 %480  ;;  %v3673_v32 = vld [vmem:[#allocation24_spill] sm:$0xff] }
 0x257   :  { %v679_v31 = vsel %vm48_vm0, %v649_v10, 0.0  ;;  %v953_v10 = vmul.f32 %v3673_v32, %v3665_v35  ;;  %v1129_v32 = vmul.f32 %v265_v57, %v3665_v35 }
 0x258   :  { %1102 = vadd.xlane.f32.xlu0 %v1101_v13  ;;  %v713_v13 = vmul.f32 %v3670_v42, %v3665_v35  ;;  %v3674_v42 = vld [vmem:[#allocation25_spill] sm:$0xff] }
 0x259   :  { %1099 = vadd.xlane.f32.xlu1 %v1098_v56  ;;  %v3671_v56 = vld [vmem:[#allocation14_spill] sm:$0xff] }
 0x25a   :  { %v712_v58 = vmul.f32 %v3671_v56, %v3667_v50  ;;  %v983_v56 = vsel %vm48_vm0, %v953_v10, 0.0 }
 0x25c   :  { %1166 = vadd.xlane.f32.xlu0 %v1165_v24  ;;  %v743_v24 = vsel %vm48_vm0, %v713_v13, 0.0  ;;  %v740_v17 = vsel %vm48_vm0, %v712_v58, 0.0  ;;  %v1065_v13 = vmul.f32 %v3674_v42, %v3665_v35  ;;  %v1064_v58 = vmul.f32 %v2778_v15, %v3667_v50  ;;  %v262_v15 = vld [vmem:[%s3594_s1 + $0xa0] sm:$0xff] }
 0x25d   :  { %1163 = vadd.xlane.f32.xlu1 %v1162_v48  ;;  %v2934_v48 = vpop.permute.xlu0 %898  ;;  %v3676_v35 = vld [vmem:[#allocation12_spill] sm:$0xff] }
 0x25e   :  { %v1092_v10 = vsel %vm48_vm0, %v1064_v58, 0.0 }
 0x260   :  { %568 = vadd.xlane.f32.xlu0 %v567_v27  ;;  %v2938_v27 = vpop.permute.xlu1 %594 }
 0x261   :  { %565 = vadd.xlane.f32.xlu1 %v564_v63  ;;  %v952_v63 = vmul.f32 %v2762_v54, %v3667_v50  ;;  %v1202_v54 = vsel %vm1186_vm2, %v2734_v49, %v481_v9 }
 0x263   :  { %v980_v46 = vsel %vm48_vm0, %v952_v63, 0.0 }
 0x264   :  { %680 = vadd.xlane.f32.xlu0 %v679_v31  ;;  %v868_v31 = vsel %vm48_vm0, %v840_v36, 0.0 }
 0x265   :  { %677 = vadd.xlane.f32.xlu1 %v676_v43  ;;  %v705_v43 = vpop.xlane.xlu1 %704 }
 0x268   :  { %744 = vadd.xlane.f32.xlu0 %v743_v24  ;;  %v1219_v24 = vsel %vm1203_vm1, %v1202_v54, %v2872_v22 }
 0x269   :  { %741 = vadd.xlane.f32.xlu1 %v740_v17  ;;  %v1236_v49 = vsel %vm1220_vm3, %v1219_v24, %v705_v43  ;;  %v1095_v17 = vsel %vm48_vm0, %v1065_v13, 0.0  ;;  %v3675_v43 = vld [vmem:[#allocation10_spill] sm:$0xff]  ;;  %v1159_v13 = vsel %vm48_vm0, %v1129_v32, 0.0 }
 0x26a   :  { %v1253_v9 = vsel %vm1237_vm4, %v1236_v49, %v2898_v6  ;;  %v535_v6 = vmul.f32 %v2676_v25, %v3675_v43  ;;  %v647_v58 = vmul.f32 %v2683_v28, %v3675_v43  ;;  %v646_v25 = vmul.f32 %v2806_v34, %v3676_v35 }
 0x26b   :  { %v1270_v22 = vsel %vm1254_vm5, %v1253_v9, %v897_v62  ;;  %v534_v62 = vmul.f32 %v2791_v51, %v3676_v35 }
 0x26c   :  { %872 = vadd.xlane.f32.xlu0 %v871_v1  ;;  %v1128_v1 = vmul.f32 %v262_v15, %v3667_v50  ;;  %v561_v54 = vsel %vm48_vm0, %v535_v6, 0.0  ;;  %v673_v24 = vsel %vm48_vm0, %v647_v58, 0.0  ;;  %v3677_v15 = vld [vmem:[#allocation16_spill] sm:$0xff]  ;;  %v670_v28 = vsel %vm48_vm0, %v646_v25, 0.0 }
 0x26d   :  { %869 = vadd.xlane.f32.xlu1 %v868_v31  ;;  %v1009_v37 = vpop.xlane.xlu0 %1008  ;;  %v558_v51 = vsel %vm48_vm0, %v534_v62, 0.0  ;;  %v711_v49 = vmul.f32 %v3677_v15, %v3675_v43  ;;  %v951_v6 = vmul.f32 %v2708_v12, %v3675_v43  ;;  %v1063_v12 = vmul.f32 %v2726_v5, %v3675_v43  ;;  %v256_v15 = vld [vmem:[%s3594_s1 + $0x70] sm:$0xff] }
 0x26e   :  { %v1287_v63 = vsel %vm1271_vm6, %v1270_v22, %v1009_v37  ;;  %v839_v22 = vmul.f32 %v2698_v45, %v3675_v43  ;;  %v950_v45 = vmul.f32 %v2836_v61, %v3676_v35 }
 0x26f   :  { %v977_v61 = vsel %vm48_vm0, %v951_v6, 0.0  ;;  %v3680_v6 = vld [vmem:[#allocation9_spill] sm:$0xff] }
 0x270   :  { %984 = vadd.xlane.f32.xlu0 %v983_v56  ;;  %v1156_v56 = vsel %vm48_vm0, %v1128_v1, 0.0  ;;  %v838_v1 = vmul.f32 %v2816_v23, %v3676_v35  ;;  %v1201_v23 = vsel %vm1186_vm2, %v2666_v0, %v2912_v59  ;;  %v1062_v0 = vmul.f32 %v2846_v18, %v3676_v35 }
 0x271   :  { %981 = vadd.xlane.f32.xlu1 %v980_v46  ;;  %v702_v36 = vpop.xlane.xlu0 %701  ;;  %v2984_v46 = vpop.permute.xlu1 %786  ;;  %v1089_v18 = vsel %vm48_vm0, %v1063_v12, 0.0 }
 0x272   :  { %v862_v62 = vsel %vm48_vm0, %v838_v1, 0.0 }
 0x274   :  { %1096 = vadd.xlane.f32.xlu0 %v1095_v17  ;;  %v3678_v17 = vld [vmem:[#allocation15_spill] sm:$0xff] }
 0x275   :  { %1093 = vadd.xlane.f32.xlu1 %v1092_v10  ;;  %v1121_v31 = vpop.xlane.xlu0 %1120  ;;  %v590_v9 = vpop.xlane.xlu1 %589  ;;  %v710_v34 = vmul.f32 %v3678_v17, %v3676_v35  ;;  %v737_v10 = vsel %vm48_vm0, %v711_v49, 0.0  ;;  %v1126_v17 = vmul.f32 %v256_v15, %v3676_v35 }
 0x276   :  { %v1304_v42 = vsel %vm1288_vm7, %v1287_v63, %v1121_v31 }
 0x277   :  { %v734_v63 = vsel %vm48_vm0, %v710_v34, 0.0 }
 0x278   :  { %1160 = vadd.xlane.f32.xlu0 %v1159_v13  ;;  %v865_v13 = vsel %vm48_vm0, %v839_v22, 0.0 }
 0x279   :  { %1157 = vadd.xlane.f32.xlu1 %v1156_v56  ;;  %v1185_v50 = vpop.xlane.xlu0 %1184  ;;  %v1218_v56 = vsel %vm1203_vm1, %v1201_v23, %v590_v9 }
 0x27a   :  { %v2977_v37 = vsel %vm1305_vm8, %v1304_v42, %v1185_v50  ;;  %v3003_v42 = vpop.permute.xlu1 %1010  ;;  %v1235_v58 = vsel %vm1220_vm3, %v1218_v56, %v702_v36  ;;  %v259_v36 = vld [vmem:[%s3594_s1 + $0x88] sm:$0xff] }
 0x27b   :  { %v1127_v9 = vmul.f32 %v259_v36, %v3675_v43  ;;  %v532_v43 = vmul.f32 %v2862_v11, %v3680_v6  ;;  %v836_v36 = vmul.f32 %v2893_v39, %v3680_v6 }
 0x27c   :  { %562 = vadd.xlane.f32.xlu0 %v561_v54 }
 0x27d   :  { %559 = vadd.xlane.f32.xlu1 %v558_v51  ;;  %v2987_v57 = vpop.xlane.xlu0 %474  ;;  %v974_v51 = vsel %vm48_vm0, %v950_v45, 0.0  ;;  %v552_v56 = vsel %vm48_vm0, %v532_v43, 0.0 }
 0x280   :  { %674 = vadd.xlane.f32.xlu0 %v673_v24 }
 0x281   :  { %671 = vadd.xlane.f32.xlu1 %v670_v28  ;;  %v894_v32 = vpop.xlane.xlu0 %893  ;;  %v1086_v28 = vsel %vm48_vm0, %v1062_v0, 0.0 }
 0x284   :  { %738 = vadd.xlane.f32.xlu0 %v737_v10  ;;  %v3679_v10 = vld [vmem:[#allocation8_spill] sm:$0xff] }
 0x285   :  { %735 = vadd.xlane.f32.xlu1 %v734_v63  ;;  %v3001_v31 = vpop.xlane.xlu0 %586  ;;  %v533_v1 = vmul.f32 %v2736_v40, %v3679_v10  ;;  %v1153_v63 = vsel %vm48_vm0, %v1127_v9, 0.0  ;;  %v645_v23 = vmul.f32 %v2755_v4, %v3679_v10  ;;  %v644_v40 = vmul.f32 %v2874_v44, %v3680_v6 }
 0x286   :  { %v949_v9 = vmul.f32 %v2780_v29, %v3679_v10  ;;  %v1060_v29 = vmul.f32 %v2920_v20, %v3680_v6 }
 0x287   :  { %v664_v4 = vsel %vm48_vm0, %v644_v40, 0.0 }
 0x288   :  { %866 = vadd.xlane.f32.xlu0 %v865_v13  ;;  %v1150_v13 = vsel %vm48_vm0, %v1126_v17, 0.0  ;;  %v856_v17 = vsel %vm48_vm0, %v836_v36, 0.0  ;;  %v1080_v40 = vsel %vm48_vm0, %v1060_v29, 0.0 }
 0x289   :  { %863 = vadd.xlane.f32.xlu1 %v862_v62  ;;  %v1006_v50 = vpop.xlane.xlu0 %1005  ;;  %v555_v62 = vsel %vm48_vm0, %v533_v1, 0.0  ;;  %v1061_v1 = vmul.f32 %v2793_v21, %v3679_v10 }
 0x28a   :  { %v766_v54 = vpop.xlane.xlu1 %765 }
 0x28b   :  { %v1252_v25 = vsel %vm1237_vm4, %v1235_v58, %v766_v54  ;;  %v667_v58 = vsel %vm48_vm0, %v645_v23, 0.0  ;;  %v3681_v54 = vld [vmem:[#allocation18_spill] sm:$0xff]  ;;  %v250_v23 = vld [vmem:[%s3594_s1 + $0x40] sm:$0xff] }
 0x28c   :  { %v1269_v59 = vsel %vm1254_vm5, %v1252_v25, %v894_v32  ;;  %978 = vadd.xlane.f32.xlu0 %v977_v61  ;;  %v709_v12 = vmul.f32 %v3681_v54, %v3679_v10  ;;  %v3682_v25 = vld [vmem:[#allocation17_spill] sm:$0xff] }
 0x28d   :  { %975 = vadd.xlane.f32.xlu1 %v974_v51  ;;  %v3027_v24 = vpop.xlane.xlu0 %698  ;;  %v1286_v5 = vsel %vm1271_vm6, %v1269_v59, %v1006_v50  ;;  %v708_v61 = vmul.f32 %v3682_v25, %v3680_v6  ;;  %v837_v59 = vmul.f32 %v2764_v30, %v3679_v10  ;;  %v948_v30 = vmul.f32 %v2906_v41, %v3680_v6  ;;  %v253_v41 = vld [vmem:[%s3594_s1 + $0x58] sm:$0xff] }
 0x28e   :  { %v3033_v49 = vpop.xlane.xlu1 %471  ;;  %v731_v51 = vsel %vm48_vm0, %v709_v12, 0.0  ;;  %v1125_v20 = vmul.f32 %v253_v41, %v3679_v10  ;;  %v3683_v12 = vld [vmem:[#allocation6_spill] sm:$0xff] }
 0x28f   :  { %v968_v43 = vsel %vm48_vm0, %v948_v30, 0.0  ;;  %v643_v36 = vmul.f32 %v2818_v47, %v3683_v12 }
 0x290   :  { %1090 = vadd.xlane.f32.xlu0 %v1089_v18  ;;  %v1147_v25 = vsel %vm48_vm0, %v1125_v20, 0.0 }
 0x291   :  { %1087 = vadd.xlane.f32.xlu1 %v1086_v28  ;;  %v1118_v34 = vpop.xlane.xlu0 %1117  ;;  %v859_v28 = vsel %vm48_vm0, %v837_v59, 0.0  ;;  %v661_v30 = vsel %vm48_vm0, %v643_v36, 0.0 }
 0x292   :  { %v3040_v32 = vsel %vm1288_vm7, %v1286_v5, %v1118_v34  ;;  %v3042_v22 = vpop.xlane.xlu1 %583  ;;  %v728_v5 = vsel %vm48_vm0, %v708_v61, 0.0  ;;  %v3684_v61 = vld [vmem:[#allocation7_spill] sm:$0xff] }
 0x293   :  { %v530_v59 = vmul.f32 %v2848_v14, %v3684_v61 }
 0x294   :  { %1154 = vadd.xlane.f32.xlu0 %v1153_v63  ;;  %v971_v63 = vsel %vm48_vm0, %v949_v9, 0.0 }
 0x295   :  { %1151 = vadd.xlane.f32.xlu1 %v1150_v13  ;;  %v3050_v35 = vpop.xlane.xlu0 %762  ;;  %v546_v9 = vsel %vm48_vm0, %v530_v59, 0.0 }
 0x296   :  { %v3052_v45 = vpop.xlane.xlu1 %695 }
 0x298   :  { %556 = vadd.xlane.f32.xlu0 %v555_v62  ;;  %v1083_v62 = vsel %vm48_vm0, %v1061_v1, 0.0 }
 0x299   :  { %553 = vadd.xlane.f32.xlu1 %v552_v56  ;;  %v3060_v11 = vpop.xlane.xlu0 %1181  ;;  %v1124_v56 = vmul.f32 %v250_v23, %v3680_v6  ;;  %v834_v23 = vmul.f32 %v2984_v46, %v3684_v61  ;;  %v1058_v46 = vmul.f32 %v3003_v42, %v3684_v61 }
 0x29a   :  { %v3062_v50 = vpop.xlane.xlu1 %759 }
 0x29b   :  { %v1144_v10 = vsel %vm48_vm0, %v1124_v56, 0.0  ;;  %v947_v56 = vmul.f32 %v2864_v7, %v3683_v12  ;;  %v850_v59 = vsel %vm48_vm0, %v834_v23, 0.0 }
 0x29c   :  { %668 = vadd.xlane.f32.xlu0 %v667_v58 }
 0x29d   :  { %665 = vadd.xlane.f32.xlu1 %v664_v4  ;;  %v3070_v44 = vpop.xlane.xlu0 %890  ;;  %v531_v4 = vmul.f32 %v2808_v60, %v3683_v12  ;;  %v642_v60 = vmul.f32 %v2938_v27, %v3684_v61  ;;  %v965_v36 = vsel %vm48_vm0, %v947_v56, 0.0 }
 0x29e   :  { %v3072_v0 = vpop.xlane.xlu1 %468 }
 0x29f   :  { %v658_v47 = vsel %vm48_vm0, %v642_v60, 0.0  ;;  %v1198_v42 = vsel %vm1186_vm2, %v2706_v53, %v3072_v0  ;;  %v247_v53 = vld [vmem:[%s3594_s1 + $0x28] sm:$0xff] }
 0x2a0   :  { %732 = vadd.xlane.f32.xlu0 %v731_v51 }
 0x2a1   :  { %729 = vadd.xlane.f32.xlu1 %v728_v5  ;;  %v3080_v15 = vpop.xlane.xlu0 %1002  ;;  %v549_v5 = vsel %vm48_vm0, %v531_v4, 0.0 }
 0x2a2   :  { %v3082_v18 = vpop.xlane.xlu1 %580 }
 0x2a4   :  { %860 = vadd.xlane.f32.xlu0 %v859_v28 }
 0x2a5   :  { %857 = vadd.xlane.f32.xlu1 %v856_v17  ;;  %v3090_v39 = vpop.xlane.xlu0 %1114  ;;  %v3685_v17 = vld [vmem:[#allocation19_spill] sm:$0xff] }
 0x2a6   :  { %v3092_v34 = vpop.xlane.xlu1 %692  ;;  %v707_v1 = vmul.f32 %v3685_v17, %v3683_v12 }
 0x2a8   :  { %972 = vadd.xlane.f32.xlu0 %v971_v63  ;;  %v706_v63 = vmul.f32 %v2591_v19, %v3684_v61  ;;  %v725_v41 = vsel %vm48_vm0, %v707_v1, 0.0  ;;  %v1200_v19 = vsel %vm1186_vm2, %v2724_v38, %v2987_v57 }
 0x2a9   :  { %969 = vadd.xlane.f32.xlu1 %v968_v43  ;;  %v3103_v13 = vpop.xlane.xlu0 %1178  ;;  %v835_v43 = vmul.f32 %v2838_v2, %v3683_v12  ;;  %v1217_v2 = vsel %vm1203_vm1, %v1200_v19, %v3001_v31 }
 0x2aa   :  { %v3108_v21 = vpop.xlane.xlu1 %756 }
 0x2ab   :  { %v853_v4 = vsel %vm48_vm0, %v835_v43, 0.0  ;;  %v946_v43 = vmul.f32 %v2934_v48, %v3684_v61 }
 0x2ac   :  { %1084 = vadd.xlane.f32.xlu0 %v1083_v62  ;;  %v722_v62 = vsel %vm48_vm0, %v706_v63, 0.0 }
 0x2ad   :  { %1081 = vadd.xlane.f32.xlu1 %v1080_v40  ;;  %v3114_v58 = vpop.xlane.xlu0 %887 }
 0x2ae   :  { %v3116_v54 = vpop.xlane.xlu1 %465 }
 0x2b0   :  { %1148 = vadd.xlane.f32.xlu0 %v1147_v25  ;;  %v1234_v25 = vsel %vm1220_vm3, %v1217_v2, %v3027_v24 }
 0x2b1   :  { %1145 = vadd.xlane.f32.xlu1 %v1144_v10  ;;  %v3124_v51 = vpop.xlane.xlu0 %999  ;;  %v1251_v38 = vsel %vm1237_vm4, %v1234_v25, %v3050_v35  ;;  %v1059_v10 = vmul.f32 %v2882_v3, %v3683_v12  ;;  %v3184_v35 = vmul.f32 0.17677669, %v2977_v37  ;;  %v1074_v3 = vsel %vm48_vm0, %v1058_v46, 0.0 }
 0x2b2   :  { %v3126_v6 = vpop.xlane.xlu1 %577  ;;  %v1268_v7 = vsel %vm1254_vm5, %v1251_v38, %v3070_v44  ;;  %v1215_v44 = vsel %vm1203_vm1, %v1198_v42, %v3082_v18  ;;  %v1320_v25 = vsel %vm1305_vm8, %v3040_v32, %v3060_v11 }
 0x2b3   :  { %v1285_v24 = vsel %vm1271_vm6, %v1268_v7, %v3080_v15  ;;  %v1232_v0 = vsel %vm1220_vm3, %v1215_v44, %v3092_v34 }
 0x2b4   :  { %550 = vadd.xlane.f32.xlu0 %v549_v5  ;;  %v1302_v5 = vsel %vm1288_vm7, %v1285_v24, %v3090_v39  ;;  %v1249_v18 = vsel %vm1237_vm4, %v1232_v0, %v3108_v21 }
 0x2b5   :  { %547 = vadd.xlane.f32.xlu1 %v546_v9  ;;  %v3134_v14 = vpop.xlane.xlu0 %1111  ;;  %v1319_v37 = vsel %vm1305_vm8, %v1302_v5, %v3103_v13  ;;  %v1077_v9 = vsel %vm48_vm0, %v1059_v10, 0.0  ;;  %v1384_v13 = vsel %vm1338_vm9, %v3184_v35, -inf  ;;  %v1196_v5 = vsel %vm1186_vm2, %v2681_v16, %v2696_v55 }
 0x2b6   :  { %v3136_v28 = vpop.xlane.xlu1 %689  ;;  %v3203_v17 = vmul.f32 0.17677669, %v1319_v37 }
 0x2b8   :  { %662 = vadd.xlane.f32.xlu0 %v661_v30  ;;  %v1123_v30 = vmul.f32 %v247_v53, %v3683_v12  ;;  %v1378_v23 = vsel %vm1338_vm9, %v3203_v17, -inf  ;;  %v3686_v53 = vld [vmem:[#allocation40_spill] sm:$0xff] }
 0x2b9   :  { %659 = vadd.xlane.f32.xlu1 %v658_v47  ;;  %v3144_v27 = vpop.xlane.xlu0 %1175  ;;  %v1195_v0 = vsel %vm1186_vm2, %v3686_v53, %v2639_v33 }
 0x2ba   :  { %v3146_v29 = vpop.xlane.xlu1 %753  ;;  %v1141_v12 = vsel %vm48_vm0, %v1123_v30, 0.0 }
 0x2bc   :  { %726 = vadd.xlane.f32.xlu0 %v725_v41 }
 0x2bd   :  { %723 = vadd.xlane.f32.xlu1 %v722_v62  ;;  %v885_v20 = vpop.xlane.xlu0 %884  ;;  %v244_v62 = vld [vmem:[%s3594_s1 + $0x10] sm:$0xff] }
 0x2be   :  { %v3157_v40 = vpop.xlane.xlu1 %881  ;;  %v1266_v60 = vsel %vm1254_vm5, %v1249_v18, %v885_v20  ;;  %v1199_v20 = vsel %vm1186_vm2, %v2660_v52, %v3033_v49  ;;  %v1122_v46 = vmul.f32 %v244_v62, %v3684_v61 }
 0x2bf   :  { %v1216_v48 = vsel %vm1203_vm1, %v1199_v20, %v3042_v22 }
 0x2c0   :  { %854 = vadd.xlane.f32.xlu0 %v853_v4  ;;  %v1233_v2 = vsel %vm1220_vm3, %v1216_v48, %v3052_v45  ;;  %v962_v4 = vsel %vm48_vm0, %v946_v43, 0.0  ;;  %v1197_v45 = vsel %vm1186_vm2, %v2647_v8, %v3116_v54 }
 0x2c1   :  { %851 = vadd.xlane.f32.xlu1 %v850_v59  ;;  %v997_v57 = vpop.xlane.xlu0 %996  ;;  %v1250_v52 = vsel %vm1237_vm4, %v1233_v2, %v3062_v50  ;;  %v1214_v32 = vsel %vm1203_vm1, %v1197_v45, %v3126_v6  ;;  %v3245_v50 = vmul.f32 0.17677669, %v1320_v25 }
 0x2c2   :  { %v3173_v31 = vpop.xlane.xlu1 %993  ;;  %v1283_v34 = vsel %vm1271_vm6, %v1266_v60, %v997_v57  ;;  %v1267_v22 = vsel %vm1254_vm5, %v1250_v52, %v3114_v58  ;;  %v1231_v58 = vsel %vm1220_vm3, %v1214_v32, %v3136_v28  ;;  %v1138_v57 = vsel %vm48_vm0, %v1122_v46, 0.0  ;;  %v3688_v32 = vld [vmem:[#allocation38_spill] sm:$0xff] }
 0x2c3   :  { %v1284_v59 = vsel %vm1271_vm6, %v1267_v22, %v3124_v51  ;;  %v1248_v54 = vsel %vm1237_vm4, %v1231_v58, %v3146_v29  ;;  %v1381_v42 = vsel %vm1338_vm9, %v3245_v50, -inf }
 0x2c4   :  { %966 = vadd.xlane.f32.xlu0 %v965_v36  ;;  %v1301_v38 = vsel %vm1288_vm7, %v1284_v59, %v3134_v14  ;;  %v1265_v51 = vsel %vm1254_vm5, %v1248_v54, %v3157_v40 }
 0x2c5   :  { %1075 = vadd.xlane.f32.xlu1 %v1074_v3  ;;  %v1109_v15 = vpop.xlane.xlu0 %1108  ;;  %v1318_v8 = vsel %vm1305_vm8, %v1301_v38, %v3144_v27  ;;  %v1282_v7 = vsel %vm1271_vm6, %v1265_v51, %v3173_v31 }
 0x2c6   :  { %v1106_v39 = vpop.xlane.xlu1 %1105  ;;  %v1300_v1 = vsel %vm1288_vm7, %v1283_v34, %v1109_v15  ;;  %v3260_v10 = vmul.f32 0.17677669, %v1318_v8 }
 0x2c7   :  { %v1299_v28 = vsel %vm1288_vm7, %v1282_v7, %v1106_v39 }
 0x2c8   :  { %1078 = vadd.xlane.f32.xlu0 %v1077_v9  ;;  %v1375_v40 = vsel %vm1338_vm9, %v3260_v10, -inf }
 0x2c9   :  { %1385 = vmax.xlane.f32.xlu1 %v1384_v13  ;;  %v1173_v47 = vpop.xlane.xlu0 %1172 }
 0x2ca   :  { %v1317_v21 = vsel %vm1305_vm8, %v1300_v1, %v1173_v47  ;;  %v1170_v63 = vpop.xlane.xlu1 %1169 }
 0x2cb   :  { %v3213_v41 = vmul.f32 0.17677669, %v1317_v21  ;;  %v1316_v27 = vsel %vm1305_vm8, %v1299_v28, %v1170_v63 }
 0x2cc   :  { %1142 = vadd.xlane.f32.xlu0 %v1141_v12  ;;  %v3266_v36 = vmul.f32 0.17677669, %v1316_v27 }
 0x2cd   :  { %1379 = vmax.xlane.f32.xlu1 %v1378_v23  ;;  %v575_v19 = vpop.xlane.xlu0 %574  ;;  %v1372_v49 = vsel %vm1338_vm9, %v3213_v41, -inf }
 0x2ce   :  { %v572_v56 = vpop.xlane.xlu1 %571  ;;  %v1369_v3 = vsel %vm1338_vm9, %v3266_v36, -inf  ;;  %v1213_v37 = vsel %vm1203_vm1, %v1196_v5, %v575_v19 }
 0x2cf   :  { %v1212_v15 = vsel %vm1203_vm1, %v1195_v0, %v572_v56 }
 0x2d0   :  { %963 = vadd.xlane.f32.xlu0 %v962_v4 }
 0x2d1   :  { %1373 = vmax.xlane.f32.xlu1 %v1372_v49  ;;  %v687_v61 = vpop.xlane.xlu0 %686 }
 0x2d2   :  { %v684_v11 = vpop.xlane.xlu1 %683  ;;  %v1230_v18 = vsel %vm1220_vm3, %v1213_v37, %v687_v61  ;;  %v3687_v61 = vld [vmem:[#allocation44_spill] sm:$0xff] }
 0x2d3   :  { %v1229_v60 = vsel %vm1220_vm3, %v1212_v15, %v684_v11  ;;  %v1194_v59 = vsel %vm1186_vm2, %v3687_v61, %v2674_v26  ;;  %v3689_v11 = vld [vmem:[#allocation36_spill] sm:$0xff] }
 0x2d4   :  { %1139 = vadd.xlane.f32.xlu0 %v1138_v57  ;;  %v1193_v38 = vsel %vm1186_vm2, %v3689_v11, %v3688_v32 }
 0x2d5   :  { %v751_v6 = vpop.xlane.xlu0 %750 }
 0x2d6   :  { %v748_v14 = vpop.xlane.xlu1 %747  ;;  %v1247_v9 = vsel %vm1237_vm4, %v1230_v18, %v751_v6 }
 0x2d7   :  { %v1246_v16 = vsel %vm1237_vm4, %v1229_v60, %v748_v14 }
 0x2d8   :  { %1382 = vmax.xlane.f32.xlu0 %v1381_v42 }
 0x2d9   :  { %v879_v29 = vpop.xlane.xlu0 %878 }
 0x2da   :  { %v876_v24 = vpop.xlane.xlu1 %875  ;;  %v1264_v30 = vsel %vm1254_vm5, %v1247_v9, %v879_v29 }
 0x2db   :  { %v1263_v34 = vsel %vm1254_vm5, %v1246_v16, %v876_v24 }
 0x2dc   :  { %1376 = vmax.xlane.f32.xlu0 %v1375_v40 }
 0x2dd   :  { %v991_v31 = vpop.xlane.xlu0 %990 }
 0x2de   :  { %v988_v44 = vpop.xlane.xlu1 %987  ;;  %v1281_v33 = vsel %vm1271_vm6, %v1264_v30, %v991_v31 }
 0x2df   :  { %v1280_v13 = vsel %vm1271_vm6, %v1263_v34, %v988_v44 }
 0x2e0   :  { %1370 = vmax.xlane.f32.xlu0 %v1369_v3 }
 0x2e1   :  { %v1103_v39 = vpop.xlane.xlu0 %1102 }
 0x2e2   :  { %v1100_v55 = vpop.xlane.xlu1 %1099  ;;  %v1298_v1 = vsel %vm1288_vm7, %v1281_v33, %v1103_v39 }
 0x2e3   :  { %v1297_v21 = vsel %vm1288_vm7, %v1280_v13, %v1100_v55  ;;  %v3690_v13 = vld [vmem:[#allocation43_spill] sm:$0xff] }
 0x2e5   :  { %v1167_v47 = vpop.xlane.xlu0 %1166 }
 0x2e6   :  { %v1315_v63 = vsel %vm1305_vm8, %v1298_v1, %v1167_v47  ;;  %v1164_v43 = vpop.xlane.xlu1 %1163  ;;  %v3691_v1 = vld [vmem:[#allocation42_spill] sm:$0xff] }
 0x2e7   :  { %v3291_v12 = vmul.f32 0.17677669, %v1315_v63  ;;  %v1314_v23 = vsel %vm1305_vm8, %v1297_v21, %v1164_v43  ;;  %v1192_v47 = vsel %vm1186_vm2, %v3691_v1, %v3690_v13  ;;  %v3692_v21 = vld [vmem:[#allocation34_spill] sm:$0xff]  ;;  %v3693_v63 = vld [vmem:[#allocation32_spill] sm:$0xff] }
 0x2e8   :  { %v3294_v62 = vmul.f32 0.17677669, %v1314_v23  ;;  %v1191_v43 = vsel %vm1186_vm2, %v3693_v63, %v3692_v21 }
 0x2e9   :  { %v569_v20 = vpop.xlane.xlu0 %568  ;;  %v1366_v19 = vsel %vm1338_vm9, %v3291_v12, -inf }
 0x2ea   :  { %v566_v48 = vpop.xlane.xlu1 %565  ;;  %1367 = vmax.xlane.f32.xlu1 %v1366_v19  ;;  %v1363_v56 = vsel %vm1338_vm9, %v3294_v62, -inf  ;;  %v1211_v58 = vsel %vm1203_vm1, %v1194_v59, %v569_v20 }
 0x2eb   :  { %1364 = vmax.xlane.f32.xlu0 %v1363_v56  ;;  %v1210_v57 = vsel %vm1203_vm1, %v1193_v38, %v566_v48 }
 0x2ed   :  { %v681_v2 = vpop.xlane.xlu0 %680 }
 0x2ee   :  { %v678_v4 = vpop.xlane.xlu1 %677  ;;  %v1228_v8 = vsel %vm1220_vm3, %v1211_v58, %v681_v2 }
 0x2ef   :  { %v1227_v51 = vsel %vm1220_vm3, %v1210_v57, %v678_v4 }
 0x2f1   :  { %v745_v46 = vpop.xlane.xlu0 %744 }
 0x2f2   :  { %v742_v25 = vpop.xlane.xlu1 %741  ;;  %v1245_v6 = vsel %vm1237_vm4, %v1228_v8, %v745_v46 }
 0x2f3   :  { %v1244_v14 = vsel %vm1237_vm4, %v1227_v51, %v742_v25 }
 0x2f5   :  { %v873_v52 = vpop.xlane.xlu0 %872 }
 0x2f6   :  { %v870_v49 = vpop.xlane.xlu1 %869  ;;  %v1262_v26 = vsel %vm1254_vm5, %v1245_v6, %v873_v52 }
 0x2f7   :  { %v1261_v28 = vsel %vm1254_vm5, %v1244_v14, %v870_v49 }
 0x2f9   :  { %v985_v22 = vpop.xlane.xlu0 %984 }
 0x2fa   :  { %v982_v45 = vpop.xlane.xlu1 %981  ;;  %v1279_v42 = vsel %vm1271_vm6, %v1262_v26, %v985_v22 }
 0x2fb   :  { %v1278_v27 = vsel %vm1271_vm6, %v1261_v28, %v982_v45 }
 0x2fd   :  { %v1097_v54 = vpop.xlane.xlu0 %1096 }
 0x2fe   :  { %v1094_v7 = vpop.xlane.xlu1 %1093  ;;  %v1296_v29 = vsel %vm1288_vm7, %v1279_v42, %v1097_v54 }
 0x2ff   :  { %v1295_v40 = vsel %vm1288_vm7, %v1278_v27, %v1094_v7 }
 0x301   :  { %v1161_v24 = vpop.xlane.xlu0 %1160 }
 0x302   :  { %v1313_v31 = vsel %vm1305_vm8, %v1296_v29, %v1161_v24  ;;  %v1158_v44 = vpop.xlane.xlu1 %1157 }
 0x303   :  { %v3319_v5 = vmul.f32 0.17677669, %v1313_v31  ;;  %v1312_v3 = vsel %vm1305_vm8, %v1295_v40, %v1158_v44  ;;  %v3694_v40 = vld [vmem:[#allocation29_spill] sm:$0xff]  ;;  %v3695_v31 = vld [vmem:[#allocation39_spill] sm:$0xff] }
 0x304   :  { %v3322_v53 = vmul.f32 0.17677669, %v1312_v3  ;;  %v1190_v44 = vsel %vm1186_vm2, %v3695_v31, %v3694_v40  ;;  %v3696_v3 = vld [vmem:[#allocation30_spill] sm:$0xff] }
 0x305   :  { %v563_v0 = vpop.xlane.xlu0 %562  ;;  %v1360_v37 = vsel %vm1338_vm9, %v3319_v5, -inf }
 0x306   :  { %v560_v15 = vpop.xlane.xlu1 %559  ;;  %1361 = vmax.xlane.f32.xlu1 %v1360_v37  ;;  %v1357_v18 = vsel %vm1338_vm9, %v3322_v53, -inf  ;;  %v1209_v23 = vsel %vm1203_vm1, %v1192_v47, %v563_v0  ;;  %v3697_v0 = vld [vmem:[#allocation41_spill] sm:$0xff] }
 0x307   :  { %1358 = vmax.xlane.f32.xlu0 %v1357_v18  ;;  %v1208_v20 = vsel %vm1203_vm1, %v1191_v43, %v560_v15  ;;  %v1189_v37 = vsel %vm1186_vm2, %v3697_v0, %v3696_v3 }
 0x309   :  { %v675_v39 = vpop.xlane.xlu0 %674 }
 0x30a   :  { %v672_v60 = vpop.xlane.xlu1 %671  ;;  %v1226_v19 = vsel %vm1220_vm3, %v1209_v23, %v675_v39 }
 0x30b   :  { %v1225_v56 = vsel %vm1220_vm3, %v1208_v20, %v672_v60 }
 0x30d   :  { %v739_v9 = vpop.xlane.xlu0 %738 }
 0x30e   :  { %v736_v55 = vpop.xlane.xlu1 %735  ;;  %v1243_v2 = vsel %vm1237_vm4, %v1226_v19, %v739_v9 }
 0x30f   :  { %v1242_v46 = vsel %vm1237_vm4, %v1225_v56, %v736_v55 }
 0x311   :  { %v867_v16 = vpop.xlane.xlu0 %866 }
 0x312   :  { %v864_v30 = vpop.xlane.xlu1 %863  ;;  %v1260_v25 = vsel %vm1254_vm5, %v1243_v2, %v867_v16 }
 0x313   :  { %v1259_v52 = vsel %vm1254_vm5, %v1242_v46, %v864_v30 }
 0x315   :  { %v979_v34 = vpop.xlane.xlu0 %978 }
 0x316   :  { %v976_v33 = vpop.xlane.xlu1 %975  ;;  %v1277_v49 = vsel %vm1271_vm6, %v1260_v25, %v979_v34 }
 0x317   :  { %v1276_v22 = vsel %vm1271_vm6, %v1259_v52, %v976_v33 }
 0x319   :  { %v1091_v48 = vpop.xlane.xlu0 %1090 }
 0x31a   :  { %v1088_v4 = vpop.xlane.xlu1 %1087  ;;  %v1294_v45 = vsel %vm1288_vm7, %v1277_v49, %v1091_v48 }
 0x31b   :  { %v1293_v59 = vsel %vm1288_vm7, %v1276_v22, %v1088_v4 }
 0x31d   :  { %v1155_v61 = vpop.xlane.xlu0 %1154 }
 0x31e   :  { %v1311_v32 = vsel %vm1305_vm8, %v1294_v45, %v1155_v61  ;;  %v1152_v11 = vpop.xlane.xlu1 %1151 }
 0x31f   :  { %v3347_v38 = vmul.f32 0.17677669, %v1311_v32  ;;  %v1310_v58 = vsel %vm1305_vm8, %v1293_v59, %v1152_v11  ;;  %v3698_v11 = vld [vmem:[#allocation37_spill] sm:$0xff] }
 0x320   :  { %v3350_v57 = vmul.f32 0.17677669, %v1310_v58  ;;  %v3699_v58 = vld [vmem:[#allocation26_spill] sm:$0xff] }
 0x321   :  { %v557_v8 = vpop.xlane.xlu0 %556  ;;  %v1354_v54 = vsel %vm1338_vm9, %v3347_v38, -inf }
 0x322   :  { %v554_v51 = vpop.xlane.xlu1 %553  ;;  %1355 = vmax.xlane.f32.xlu1 %v1354_v54  ;;  %v1351_v6 = vsel %vm1338_vm9, %v3350_v57, -inf  ;;  %v1207_v15 = vsel %vm1203_vm1, %v1190_v44, %v557_v8  ;;  %v1188_v8 = vsel %vm1186_vm2, %v3699_v58, %v3698_v11 }
 0x323   :  { %1352 = vmax.xlane.f32.xlu0 %v1351_v6  ;;  %v1206_v18 = vsel %vm1203_vm1, %v1189_v37, %v554_v51 }
 0x325   :  { %v669_v7 = vpop.xlane.xlu0 %668 }
 0x326   :  { %v666_v14 = vpop.xlane.xlu1 %665  ;;  %v1224_v39 = vsel %vm1220_vm3, %v1207_v15, %v669_v7 }
 0x327   :  { %v1223_v9 = vsel %vm1220_vm3, %v1206_v18, %v666_v14 }
 0x329   :  { %v733_v26 = vpop.xlane.xlu0 %732 }
 0x32a   :  { %v730_v28 = vpop.xlane.xlu1 %729  ;;  %v1241_v55 = vsel %vm1237_vm4, %v1224_v39, %v733_v26 }
 0x32b   :  { %v1240_v30 = vsel %vm1237_vm4, %v1223_v9, %v730_v28 }
 0x32d   :  { %v861_v42 = vpop.xlane.xlu0 %860 }
 0x32e   :  { %v858_v27 = vpop.xlane.xlu1 %857  ;;  %v1258_v34 = vsel %vm1254_vm5, %v1241_v55, %v861_v42 }
 0x32f   :  { %v1257_v33 = vsel %vm1254_vm5, %v1240_v30, %v858_v27  ;;  %v3700_v27 = vld [vmem:[#allocation28_spill] sm:$0xff] }
 0x331   :  { %v973_v29 = vpop.xlane.xlu0 %972 }
 0x332   :  { %v970_v24 = vpop.xlane.xlu1 %969  ;;  %v1275_v13 = vsel %vm1271_vm6, %v1258_v34, %v973_v29  ;;  %v3701_v29 = vld [vmem:[#allocation27_spill] sm:$0xff] }
 0x333   :  { %v1274_v1 = vsel %vm1271_vm6, %v1257_v33, %v970_v24  ;;  %v1187_v24 = vsel %vm1186_vm2, %v3701_v29, %v3700_v27 }
 0x335   :  { %v1085_v60 = vpop.xlane.xlu0 %1084 }
 0x336   :  { %v1082_v16 = vpop.xlane.xlu1 %1081  ;;  %v1292_v47 = vsel %vm1288_vm7, %v1275_v13, %v1085_v60 }
 0x337   :  { %v1291_v63 = vsel %vm1288_vm7, %v1274_v1, %v1082_v16 }
 0x339   :  { %v1149_v21 = vpop.xlane.xlu0 %1148 }
 0x33a   :  { %v1309_v43 = vsel %vm1305_vm8, %v1292_v47, %v1149_v21  ;;  %v1146_v23 = vpop.xlane.xlu1 %1145 }
 0x33b   :  { %v3375_v20 = vmul.f32 0.17677669, %v1309_v43  ;;  %v1308_v19 = vsel %vm1305_vm8, %v1291_v63, %v1146_v23 }
 0x33c   :  { %v3378_v48 = vmul.f32 0.17677669, %v1308_v19 }
 0x33d   :  { %v551_v56 = vpop.xlane.xlu0 %550  ;;  %v1348_v2 = vsel %vm1338_vm9, %v3375_v20, -inf }
 0x33e   :  { %v548_v4 = vpop.xlane.xlu1 %547  ;;  %1349 = vmax.xlane.f32.xlu1 %v1348_v2  ;;  %v1345_v46 = vsel %vm1338_vm9, %v3378_v48, -inf  ;;  %v1205_v54 = vsel %vm1203_vm1, %v1188_v8, %v551_v56 }
 0x33f   :  { %1346 = vmax.xlane.f32.xlu0 %v1345_v46  ;;  %v1204_v3 = vsel %vm1203_vm1, %v1187_v24, %v548_v4 }
 0x341   :  { %v663_v25 = vpop.xlane.xlu0 %662 }
 0x342   :  { %v660_v52 = vpop.xlane.xlu1 %659  ;;  %v1222_v51 = vsel %vm1220_vm3, %v1205_v54, %v663_v25 }
 0x343   :  { %v1221_v15 = vsel %vm1220_vm3, %v1204_v3, %v660_v52 }
 0x345   :  { %v727_v49 = vpop.xlane.xlu0 %726 }
 0x346   :  { %v724_v22 = vpop.xlane.xlu1 %723  ;;  %v1239_v7 = vsel %vm1237_vm4, %v1222_v51, %v727_v49 }
 0x347   :  { %v1238_v39 = vsel %vm1237_vm4, %v1221_v15, %v724_v22 }
 0x349   :  { %v855_v45 = vpop.xlane.xlu0 %854 }
 0x34a   :  { %v852_v61 = vpop.xlane.xlu1 %851  ;;  %v1256_v26 = vsel %vm1254_vm5, %v1239_v7, %v855_v45 }
 0x34b   :  { %v1255_v60 = vsel %vm1254_vm5, %v1238_v39, %v852_v61 }
 0x34d   :  { %v967_v59 = vpop.xlane.xlu0 %966 }
 0x34e   :  { %v1076_v32 = vpop.xlane.xlu1 %1075  ;;  %v1273_v42 = vsel %vm1271_vm6, %v1256_v26, %v967_v59 }
 0x351   :  { %v1079_v6 = vpop.xlane.xlu0 %1078 }
 0x352   :  { %v1386_v14 = vpop.xlane.xlu1 %1385  ;;  %v1290_v40 = vsel %vm1288_vm7, %v1273_v42, %v1079_v6 }
 0x353   :  { %v1402_v28 = vsub.f32 %v3184_v35, %v1386_v14  ;;  %v1917_v14 = vmov 0.0  }
 0x354   :  { %1786 = vmatprep.subr.mxu1 %v1917_v14  ;;  %1818 = vmatprep.mubr.msk.f32.mxu1 %vm1918_vm10, %v1917_v14 }
 0x355   :  { %v1433_v31 = vmul.f32 1.442695, %v1402_v28  ;;  %v1143_v44 = vpop.xlane.xlu0 %1142 }
 0x356   :  { %v1307_v0 = vsel %vm1305_vm8, %v1290_v40, %v1143_v44  ;;  %v1380_v37 = vpop.xlane.xlu1 %1379 }
 0x357   :  { %1828 = vpow2.f32 %v1433_v31  ;;  %v3400_v18 = vmul.f32 0.17677669, %v1307_v0  ;;  %v1400_v35 = vsub.f32 %v3203_v17, %v1380_v37 }
 0x359   :  { %v1429_v9 = vmul.f32 1.442695, %v1400_v35  ;;  %v964_v55 = vpop.xlane.xlu0 %963  ;;  %v1342_v16 = vsel %vm1338_vm9, %v3400_v18, -inf }
 0x35a   :  { %v1272_v30 = vsel %vm1271_vm6, %v1255_v60, %v964_v55  ;;  %v1374_v34 = vpop.xlane.xlu1 %1373  ;;  %1343 = vmax.xlane.f32.xlu1 %v1342_v16 }
 0x35b   :  { %1830 = vpow2.f32 %v1429_v9  ;;  %v1398_v33 = vsub.f32 %v3213_v41, %v1374_v34  ;;  %v1289_v1 = vsel %vm1288_vm7, %v1272_v30, %v1076_v32 }
 0x35d   :  { %v1425_v13 = vmul.f32 1.442695, %v1398_v33  ;;  %v1140_v17 = vpop.xlane.xlu0 %1139 }
 0x35e   :  { %v1306_v47 = vsel %vm1305_vm8, %v1289_v1, %v1140_v17 }
 0x35f   :  { %1832 = vpow2.f32 %v1425_v13  ;;  %v3411_v21 = vmul.f32 0.17677669, %v1306_v47 }
 0x361   :  { %v1383_v63 = vpop.xlane.xlu0 %1382  ;;  %v1339_v43 = vsel %vm1338_vm9, %v3411_v21, -inf }
 0x362   :  { %v1401_v23 = vsub.f32 %v3245_v50, %v1383_v63  ;;  %1340 = vmax.xlane.f32.xlu0 %v1339_v43 }
 0x364   :  { %v3416_v19 = vpop.eup %1828  ;;  %v1431_v56 = vmul.f32 1.442695, %v1401_v23 }
 0x365   :  { %v1377_v41 = vpop.xlane.xlu0 %1376  ;;  %v1480_v2 = vsel %vm1338_vm9, %v3416_v19, 0.0 }
 0x366   :  { %1834 = vpow2.f32 %v1431_v56  ;;  %v1399_v4 = vsub.f32 %v3260_v10, %v1377_v41  ;;  %1481 = vadd.xlane.f32.xlu1 %v1480_v2 }
 0x368   :  { %v3421_v46 = vpop.eup %1830  ;;  %v1427_v25 = vmul.f32 1.442695, %v1399_v4 }
 0x369   :  { %v1371_v52 = vpop.xlane.xlu0 %1370  ;;  %v1474_v49 = vsel %vm1338_vm9, %v3421_v46, 0.0 }
 0x36a   :  { %1836 = vpow2.f32 %v1427_v25  ;;  %v1397_v50 = vsub.f32 %v3266_v36, %v1371_v52  ;;  %1475 = vadd.xlane.f32.xlu1 %v1474_v49 }
 0x36c   :  { %v3426_v22 = vpop.eup %1832  ;;  %v1423_v45 = vmul.f32 1.442695, %v1397_v50 }
 0x36d   :  { %v1468_v61 = vsel %vm1338_vm9, %v3426_v22, 0.0 }
 0x36e   :  { %1838 = vpow2.f32 %v1423_v45  ;;  %1469 = vadd.xlane.f32.xlu1 %v1468_v61 }
 0x373   :  { %v3430_v10 = vpop.eup %1834  ;;  %v1368_v59 = vpop.xlane.xlu1 %1367 }
 0x374   :  { %v1396_v32 = vsub.f32 %v3291_v12, %v1368_v59  ;;  %v1365_v11 = vpop.xlane.xlu0 %1364  ;;  %v1477_v58 = vsel %vm1338_vm9, %v3430_v10, 0.0 }
 0x375   :  { %v1395_v36 = vsub.f32 %v3294_v62, %v1365_v11  ;;  %1478 = vadd.xlane.f32.xlu0 %v1477_v58 }
 0x376   :  { %v1421_v8 = vmul.f32 1.442695, %v1396_v32 }
 0x377   :  { %v3436_v54 = vpop.eup %1836  ;;  %v1419_v51 = vmul.f32 1.442695, %v1395_v36 }
 0x378   :  { %1840 = vpow2.f32 %v1421_v8  ;;  %v1471_v6 = vsel %vm1338_vm9, %v3436_v54, 0.0 }
 0x379   :  { %1842 = vpow2.f32 %v1419_v51  ;;  %1472 = vadd.xlane.f32.xlu0 %v1471_v6 }
 0x37b   :  { %v3440_v7 = vpop.eup %1838 }
 0x37c   :  { %v1465_v12 = vsel %vm1338_vm9, %v3440_v7, 0.0 }
 0x37d   :  { %1466 = vadd.xlane.f32.xlu0 %v1465_v12  ;;  %v1529_v12 = vld [vmem:[%s3595_s2 + $0x70] sm:$0xff] }
 0x385   :  { %v3445_v62 = vpop.eup %1840 }
 0x386   :  { %v3447_v26 = vpop.eup %1842  ;;  %v1462_v28 = vsel %vm1338_vm9, %v3445_v62, 0.0 }
 0x387   :  { %1463 = vadd.xlane.f32.xlu1 %v1462_v28  ;;  %v1459_v42 = vsel %vm1338_vm9, %v3447_v26, 0.0 }
 0x388   :  { %1460 = vadd.xlane.f32.xlu0 %v1459_v42 }
 0x38f   :  { %v1362_v27 = vpop.xlane.xlu1 %1361 }
 0x390   :  { %v1394_v29 = vsub.f32 %v3319_v5, %v1362_v27  ;;  %v1359_v24 = vpop.xlane.xlu0 %1358 }
 0x391   :  { %v1393_v40 = vsub.f32 %v3322_v53, %v1359_v24  ;;  %v1528_v24 = vld [vmem:[%s3595_s2 + $0x68] sm:$0xff] }
 0x392   :  { %v1417_v31 = vmul.f32 1.442695, %v1394_v29 }
 0x393   :  { %v1415_v44 = vmul.f32 1.442695, %v1393_v40 }
 0x394   :  { %1844 = vpow2.f32 %v1417_v31 }
 0x395   :  { %1846 = vpow2.f32 %v1415_v44 }
 0x3a1   :  { %v3455_v3 = vpop.eup %1844 }
 0x3a2   :  { %v3457_v0 = vpop.eup %1846  ;;  %v1456_v37 = vsel %vm1338_vm9, %v3455_v3, 0.0 }
 0x3a3   :  { %1457 = vadd.xlane.f32.xlu1 %v1456_v37  ;;  %v1453_v15 = vsel %vm1338_vm9, %v3457_v0, 0.0 }
 0x3a4   :  { %1454 = vadd.xlane.f32.xlu0 %v1453_v15 }
 0x3ab   :  { %v1356_v5 = vpop.xlane.xlu1 %1355 }
 0x3ac   :  { %v1392_v35 = vsub.f32 %v3347_v38, %v1356_v5  ;;  %v1353_v53 = vpop.xlane.xlu0 %1352 }
 0x3ad   :  { %v1391_v39 = vsub.f32 %v3350_v57, %v1353_v53 }
 0x3ae   :  { %v1413_v60 = vmul.f32 1.442695, %v1392_v35  ;;  %v1526_v35 = vld [vmem:[%s3595_s2 + $0x58] sm:$0xff] }
 0x3af   :  { %v1411_v9 = vmul.f32 1.442695, %v1391_v39  ;;  %v1525_v39 = vld [vmem:[%s3595_s2 + $0x50] sm:$0xff] }
 0x3b0   :  { %1848 = vpow2.f32 %v1413_v60 }
 0x3b1   :  { %1850 = vpow2.f32 %v1411_v9 }
 0x3bd   :  { %v3465_v55 = vpop.eup %1848 }
 0x3be   :  { %v3467_v16 = vpop.eup %1850  ;;  %v1450_v30 = vsel %vm1338_vm9, %v3465_v55, 0.0 }
 0x3bf   :  { %1451 = vadd.xlane.f32.xlu1 %v1450_v30  ;;  %v1447_v34 = vsel %vm1338_vm9, %v3467_v16, 0.0 }
 0x3c0   :  { %1448 = vadd.xlane.f32.xlu0 %v1447_v34 }
 0x3c7   :  { %v1350_v38 = vpop.xlane.xlu1 %1349 }
 0x3c8   :  { %v1390_v33 = vsub.f32 %v3375_v20, %v1350_v38  ;;  %v1347_v57 = vpop.xlane.xlu0 %1346 }
 0x3c9   :  { %v1389_v13 = vsub.f32 %v3378_v48, %v1347_v57 }
 0x3ca   :  { %v1409_v1 = vmul.f32 1.442695, %v1390_v33  ;;  %v1523_v33 = vld [vmem:[%s3595_s2 + $0x40] sm:$0xff] }
 0x3cb   :  { %v1407_v17 = vmul.f32 1.442695, %v1389_v13 }
 0x3cc   :  { %1852 = vpow2.f32 %v1409_v1 }
 0x3cd   :  { %1854 = vpow2.f32 %v1407_v17 }
 0x3d9   :  { %v3475_v47 = vpop.eup %1852 }
 0x3da   :  { %v3477_v63 = vpop.eup %1854  ;;  %v1444_v43 = vsel %vm1338_vm9, %v3475_v47, 0.0 }
 0x3db   :  { %1445 = vadd.xlane.f32.xlu1 %v1444_v43  ;;  %v1441_v23 = vsel %vm1338_vm9, %v3477_v63, 0.0 }
 0x3dc   :  { %1442 = vadd.xlane.f32.xlu0 %v1441_v23 }
 0x3e3   :  { %v1344_v20 = vpop.xlane.xlu1 %1343 }
 0x3e4   :  { %v1388_v56 = vsub.f32 %v3400_v18, %v1344_v20 }
 0x3e6   :  { %v1405_v48 = vmul.f32 1.442695, %v1388_v56  ;;  %v1521_v56 = vld [vmem:[%s3595_s2 + $0x30] sm:$0xff] }
 0x3e8   :  { %1856 = vpow2.f32 %v1405_v48 }
 0x3eb   :  { %v1341_v41 = vpop.xlane.xlu0 %1340 }
 0x3ec   :  { %v1387_v2 = vsub.f32 %v3411_v21, %v1341_v41  ;;  %v1530_v21 = vld [vmem:[%s3595_s2 + $0x78] sm:$0xff] }
 0x3ee   :  { %v1403_v4 = vmul.f32 1.442695, %v1387_v2 }
 0x3ef   :  { %v1482_v25 = vpop.xlane.xlu1 %1481 }
 0x3f0   :  { %1858 = vpow2.f32 %v1403_v4 }
 0x3f1   :  { %1860 = vrcp.f32 %v1482_v25 }
 0x3f3   :  { %v1476_v50 = vpop.xlane.xlu1 %1475 }
 0x3f4   :  { %1862 = vrcp.f32 %v1476_v50 }
 0x3f5   :  { %v3485_v52 = vpop.eup %1856 }
 0x3f6   :  { %v1438_v49 = vsel %vm1338_vm9, %v3485_v52, 0.0 }
 0x3f7   :  { %1439 = vadd.xlane.f32.xlu1 %v1438_v49  ;;  %v1470_v36 = vpop.xlane.xlu1 %1469 }
 0x3fd   :  { %v3489_v45 = vpop.eup %1858 }
 0x3fe   :  { %v1861_v61 = vpop.eup %1860  ;;  %v1479_v18 = vpop.xlane.xlu0 %1478  ;;  %v1435_v59 = vsel %vm1338_vm9, %v3489_v45, 0.0 }
 0x3ff   :  { %1864 = vrcp.f32 %v1479_v18  ;;  %1436 = vadd.xlane.f32.xlu0 %v1435_v59  ;;  %v1514_v32 = vmul.f32 %v1861_v61, %v3416_v19  ;;  %v1519_v61 = vld [vmem:[%s3595_s2 + $0x20] sm:$0xff] }
 0x401   :  { %v1546_v11 = vmul.f32 %v1530_v21, %v1514_v32  ;;  %v1863_v51 = vpop.eup %1862 }
 0x402   :  { %v1473_v58 = vpop.xlane.xlu0 %1472  ;;  %v1512_v42 = vmul.f32 %v1863_v51, %v3421_v46  ;;  %v1527_v46 = vld [vmem:[%s3595_s2 + $0x60] sm:$0xff] }
 0x403   :  { %1787 = vmatpush3.xpose.msk.msra.mxu1 %vm1338_vm9, %v1546_v11  ;;  %1866 = vrcp.f32 %v1473_v58 }
 0x404   :  { %1788 = vmatprep.subr.mxu1 %v1917_v14  ;;  %1868 = vrcp.f32 %v1470_v36  ;;  %v1544_v31 = vmul.f32 %v1528_v24, %v1512_v42 }
 0x406   :  { %v1467_v8 = vpop.xlane.xlu0 %1466 }
 0x407   :  { %1870 = vrcp.f32 %v1467_v8  ;;  %v1517_v8 = vld [vmem:[%s3595_s2 + $0x10] sm:$0xff] }
 0x40c   :  { %v1865_v6 = vpop.eup %1864 }
 0x40d   :  { %v1513_v28 = vmul.f32 %v1865_v6, %v3430_v10 }
 0x40f   :  { %v1545_v19 = vmul.f32 %v1529_v12, %v1513_v28 }
 0x410   :  { %v1867_v27 = vpop.eup %1866  ;;  %v1464_v29 = vpop.xlane.xlu1 %1463 }
 0x411   :  { %1872 = vrcp.f32 %v1464_v29  ;;  %1789 = vmatpush3.xpose.msk.msra.mxu1 %vm1338_vm9, %v1545_v19  ;;  %v1461_v40 = vpop.xlane.xlu0 %1460  ;;  %v1511_v44 = vmul.f32 %v1867_v27, %v3436_v54  ;;  %v1869_v10 = vpop.eup %1868  ;;  %v1515_v27 = vld [vmem:[%s3595_s2] sm:$0xff] }
 0x412   :  { %1790 = vmatprep.subr.mxu1 %v1917_v14  ;;  %1874 = vrcp.f32 %v1461_v40  ;;  %v1510_v15 = vmul.f32 %v1869_v10, %v3426_v22  ;;  %v1919_v40 = vmov 1.0  }
 0x413   :  { %v1543_v37 = vmul.f32 %v1527_v46, %v1511_v44 }
 0x414   :  { %v1871_v5 = vpop.eup %1870  ;;  %v1542_v54 = vmul.f32 %v1526_v35, %v1510_v15 }
 0x415   :  { %1791 = vmatpush3.xpose.msk.msra.mxu1 %vm1338_vm9, %v1544_v31  ;;  %v1509_v53 = vmul.f32 %v1871_v5, %v3440_v7  ;;  %v1524_v7 = vld [vmem:[%s3595_s2 + $0x48] sm:$0xff] }
 0x416   :  { %1792 = vmatprep.subr.mxu1 %v1917_v14 }
 0x417   :  { %v1541_v60 = vmul.f32 %v1525_v39, %v1509_v53 }
 0x419   :  { %1793 = vmatpush3.xpose.msk.msra.mxu1 %vm1338_vm9, %v1543_v37 }
 0x41a   :  { %1794 = vmatprep.subr.mxu1 %v1917_v14 }
 0x41d   :  { %1795 = vmatpush3.xpose.msk.msra.mxu1 %vm1338_vm9, %v1542_v54 }
 0x41e   :  { %v1873_v22 = vpop.eup %1872  ;;  %1796 = vmatprep.subr.mxu1 %v1917_v14 }
 0x41f   :  { %v1508_v9 = vmul.f32 %v1873_v22, %v3445_v62  ;;  %v1875_v30 = vpop.eup %1874 }
 0x420   :  { %v1507_v38 = vmul.f32 %v1875_v30, %v3447_v26  ;;  %v1522_v26 = vld [vmem:[%s3595_s2 + $0x38] sm:$0xff] }
 0x421   :  { %1797 = vmatpush3.xpose.msk.msra.mxu1 %vm1338_vm9, %v1541_v60  ;;  %v1540_v34 = vmul.f32 %v1524_v7, %v1508_v9 }
 0x422   :  { %1798 = vmatprep.subr.mxu1 %v1917_v14  ;;  %v1539_v62 = vmul.f32 %v1523_v33, %v1507_v38 }
 0x425   :  { %1799 = vmatpush3.xpose.msk.msra.mxu1 %vm1338_vm9, %v1540_v34 }
 0x426   :  { %1800 = vmatprep.subr.mxu1 %v1917_v14 }
 0x429   :  { %1801 = vmatpush3.xpose.msk.msra.mxu1 %vm1338_vm9, %v1539_v62 }
 0x42a   :  { %1802 = vmatprep.subr.mxu1 %v1917_v14 }
 0x42c   :  { %v1458_v57 = vpop.xlane.xlu1 %1457 }
 0x42d   :  { %1876 = vrcp.f32 %v1458_v57  ;;  %v1455_v13 = vpop.xlane.xlu0 %1454 }
 0x42e   :  { %1878 = vrcp.f32 %v1455_v13 }
 0x43a   :  { %v1877_v1 = vpop.eup %1876 }
 0x43b   :  { %v1879_v17 = vpop.eup %1878  ;;  %v1506_v43 = vmul.f32 %v1877_v1, %v3455_v3 }
 0x43c   :  { %v1505_v20 = vmul.f32 %v1879_v17, %v3457_v0  ;;  %v1520_v0 = vld [vmem:[%s3595_s2 + $0x28] sm:$0xff] }
 0x43d   :  { %v1538_v23 = vmul.f32 %v1522_v26, %v1506_v43 }
 0x43e   :  { %v1537_v48 = vmul.f32 %v1521_v56, %v1505_v20 }
 0x43f   :  { %1803 = vmatpush3.xpose.msk.msra.mxu1 %vm1338_vm9, %v1538_v23 }
 0x440   :  { %1804 = vmatprep.subr.mxu1 %v1917_v14 }
 0x443   :  { %1805 = vmatpush3.xpose.msk.msra.mxu1 %vm1338_vm9, %v1537_v48 }
 0x444   :  { %1806 = vmatprep.subr.mxu1 %v1917_v14 }
 0x448   :  { %v1452_v41 = vpop.xlane.xlu1 %1451 }
 0x449   :  { %1880 = vrcp.f32 %v1452_v41  ;;  %v1449_v2 = vpop.xlane.xlu0 %1448 }
 0x44a   :  { %1882 = vrcp.f32 %v1449_v2 }
 0x456   :  { %v1881_v3 = vpop.eup %1880 }
 0x457   :  { %v1883_v4 = vpop.eup %1882  ;;  %v1504_v25 = vmul.f32 %v1881_v3, %v3465_v55 }
 0x458   :  { %v1503_v50 = vmul.f32 %v1883_v4, %v3467_v16  ;;  %v1518_v16 = vld [vmem:[%s3595_s2 + $0x18] sm:$0xff] }
 0x459   :  { %v1536_v49 = vmul.f32 %v1520_v0, %v1504_v25 }
 0x45a   :  { %v1535_v18 = vmul.f32 %v1519_v61, %v1503_v50 }
 0x45b   :  { %1807 = vmatpush3.xpose.msk.msra.mxu1 %vm1338_vm9, %v1536_v49 }
 0x45c   :  { %1808 = vmatprep.subr.mxu1 %v1917_v14 }
 0x45f   :  { %1809 = vmatpush3.xpose.msk.msra.mxu1 %vm1338_vm9, %v1535_v18 }
 0x460   :  { %1810 = vmatprep.subr.mxu1 %v1917_v14 }
 0x464   :  { %v1446_v59 = vpop.xlane.xlu1 %1445 }
 0x465   :  { %1884 = vrcp.f32 %v1446_v59  ;;  %v1443_v21 = vpop.xlane.xlu0 %1442 }
 0x466   :  { %1886 = vrcp.f32 %v1443_v21 }
 0x472   :  { %v1885_v55 = vpop.eup %1884 }
 0x473   :  { %v1887_v32 = vpop.eup %1886  ;;  %v1502_v11 = vmul.f32 %v1885_v55, %v3475_v47 }
 0x474   :  { %v1501_v36 = vmul.f32 %v1887_v32, %v3477_v63  ;;  %v1516_v63 = vld [vmem:[%s3595_s2 + $0x8] sm:$0xff] }
 0x475   :  { %v1534_v58 = vmul.f32 %v1518_v16, %v1502_v11 }
 0x476   :  { %v1533_v51 = vmul.f32 %v1517_v8, %v1501_v36 }
 0x477   :  { %1811 = vmatpush3.xpose.msk.msra.mxu1 %vm1338_vm9, %v1534_v58 }
 0x478   :  { %1812 = vmatprep.subr.mxu1 %v1917_v14 }
 0x47b   :  { %1813 = vmatpush3.xpose.msk.msra.mxu1 %vm1338_vm9, %v1533_v51 }
 0x47c   :  { %1814 = vmatprep.subr.mxu1 %v1917_v14 }
 0x480   :  { %v1440_v6 = vpop.xlane.xlu1 %1439 }
 0x481   :  { %1888 = vrcp.f32 %v1440_v6 }
 0x488   :  { %v1437_v12 = vpop.xlane.xlu0 %1436 }
 0x489   :  { %1890 = vrcp.f32 %v1437_v12 }
 0x48e   :  { %v1889_v47 = vpop.eup %1888 }
 0x48f   :  { %v1500_v28 = vmul.f32 %v1889_v47, %v3485_v52 }
 0x491   :  { %v1532_v19 = vmul.f32 %v1516_v63, %v1500_v28 }
 0x493   :  { %1815 = vmatpush3.xpose.msk.msra.mxu1 %vm1338_vm9, %v1532_v19 }
 0x494   :  { %1816 = vmatprep.subr.mxu1 %v1917_v14 }
 0x496   :  { %v1891_v42 = vpop.eup %1890 }
 0x497   :  { %v1499_v29 = vmul.f32 %v1891_v42, %v3489_v45 }
 0x499   :  { %v1531_v24 = vmul.f32 %v1515_v27, %v1499_v29 }
 0x49b   :  { %1817 = vmatpush3.xpose.msk.msra.mxu1 %vm1338_vm9, %v1531_v24 }
 0x49e   :  { %1819 = vmatmul.mubr.msk.f32.vlgmr.msra.gmra.mxu1 %vm1338_vm9, %v1919_v40 }
 0x55e   :  { %v1664_v52 = vpop.f32.mrf.mxu1 }
 0x55f   :  { %1668 = vst [vmem:[#allocation2] sm:$0x1] %v1664_v52 }
 0x560   :  { %v1820_v31 = vpop.f32.mrf.mxu1 }
 0x561   :  { %1903 = shalt.err (!%p1900_p4)
}
 0x562   :  { %1678 = dma.vmem_to_hbm [thread:$0]  %s1676_s30, 16, %s3598_s5, [#allocation3]  }
 0x563   :  { %1912 = dma.done.wait [#allocation3], 16  }
 0x564   :  { %1913 = vsyncadd [#allocation3], 4294967280 }
 0x565   :  { %1682 = vsyncpa [#allocation3], 1 }

</bundles_post_ra>
